<compile_context>
chip_gen: v7x
topology: tpu7x:2x2x1
jax: 0.10.0
libtpu: 0.0.40
codegen_flags: <defaults>
</compile_context>

<pallas_src>
import jax
import jax.numpy as jnp
from jax import lax
from jax.experimental import pallas as pl
from jax.experimental.pallas import tpu as pltpu


def _autoencoder_kernel(x_ref, w1_ref, b1_ref, w2_ref, b2_ref, rec_ref, lat_ref):
    x = x_ref[...]                                                    # (bm, D)
    # encoder: Linear + ReLU (MXU matmul, f32 accumulation; biases already f32)
    h = jnp.dot(x, w1_ref[...], preferred_element_type=jnp.float32)  # (bm, L)
    latent = jnp.maximum(h + b1_ref[...], 0.0)
    lat_ref[...] = latent.astype(lat_ref.dtype)
    # decoder: Linear + Sigmoid (cast back to weight dtype for the MXU, f32 accum)
    z = jnp.dot(latent.astype(w2_ref.dtype), w2_ref[...],
                preferred_element_type=jnp.float32)                  # (bm, D)
    rec_ref[...] = jax.nn.sigmoid(z + b2_ref[...]).astype(rec_ref.dtype)


def _round_up(n, m):
    return ((n + m - 1) // m) * m


def _vmem_capacity_bytes():
    """Physical VMEM per TensorCore; conservative (v7x-sized) fallback."""
    try:
        cap = getattr(pltpu.get_tpu_info(), "vmem_capacity_bytes", None)
        if cap:
            return int(cap)
    except Exception:
        pass
    return 64 * 1024 * 1024


def patch_autoencoder(x, w1, b1, w2, b2, *, bm=None):
    """Fused PatchAutoencoder forward.

    x : (N, input_dim)
    w1: (input_dim, latent_dim)  (pre-transposed encoder weight)
    b1: (latent_dim,) or (1, latent_dim)
    w2: (latent_dim, input_dim)  (pre-transposed decoder weight)
    b2: (input_dim,) or (1, input_dim)
    Returns (reconstructed (N, input_dim), latent (N, latent_dim)).
    """
    N, D = x.shape
    L = w1.shape[1]
    itemsize = jnp.dtype(x.dtype).itemsize
    sub = 8 if itemsize >= 4 else (16 if itemsize == 2 else 32)   # sublane multiple

    # Tiny bias vectors always live in f32 -> no casts inside the kernel body.
    b1 = b1.astype(jnp.float32).reshape(1, L)
    b2 = b2.astype(jnp.float32).reshape(1, D)

    w_itemsize = jnp.dtype(w1.dtype).itemsize
    weight_bytes = (D * L + L * D) * w_itemsize + (L + D) * 4

    # Generation-aware VMEM cap: ~48 MiB on v7x (64 MiB phys), ~96 MiB on v5e/v6e.
    vmem_cap = _vmem_capacity_bytes()
    vmem_limit = max(32 * 1024 * 1024, (vmem_cap * 3) // 4)

    # TODO(synk): add a K-tiled fallback (extra "arbitrary" grid axis over D with an
    # f32 VMEM accumulator) once weight_bytes exceeds ~25% of vmem_limit; for the
    # shapes used here the weights stay fully resident.

    if bm is None:
        # Bytes per batch row actually resident in VMEM:
        #   double-buffered x/rec/lat tiles + f32 intermediates (h/latent + z).
        per_row = 2 * (2 * D + L) * itemsize + (D + 2 * L) * 4
        budget = max(vmem_limit - weight_bytes - 2 * 1024 * 1024, 2 * 1024 * 1024)
        bm = budget // max(per_row, 1)
        # Byte-based cap: keep the pipelined x tile around ~2 MiB.
        bm = min(bm, max(sub, (2 * 1024 * 1024) // max(D * itemsize, 1)))
        # Never tile larger than the (sublane-rounded) batch itself.
        bm = min(bm, _round_up(N, sub))
        # Keep >= 2 grid steps when the batch allows so both v7x TensorCores work.
        if N >= 2 * sub:
            bm = min(bm, _round_up(pl.cdiv(N, 2), sub))
        bm = max(sub, (bm // sub) * sub)
    else:
        bm = max(sub, _round_up(min(bm, _round_up(N, sub)), sub))

    # Even step count: balances the two v7x TensorCores; harmless on 1-TC chips.
    steps = pl.cdiv(N, bm)
    if steps > 1 and steps % 2 == 1:
        bm = max(sub, _round_up(pl.cdiv(N, steps + 1), sub))
        steps = pl.cdiv(N, bm)
    grid = (steps,)

    cost = pl.CostEstimate(
        flops=4 * N * D * L,                                   # two matmuls
        transcendentals=N * D,                                 # sigmoid
        bytes_accessed=N * (2 * D + L) * itemsize + weight_bytes,
    )

    # Constant operands: single resident VMEM copy (no per-step double buffering).
    resident = pl.BlockSpec(memory_space=pltpu.MemorySpace.VMEM)

    rec, lat = pl.pallas_call(
        _autoencoder_kernel,
        out_shape=(
            jax.ShapeDtypeStruct((N, D), x.dtype),   # reconstructed
            jax.ShapeDtypeStruct((N, L), x.dtype),   # latent
        ),
        grid_spec=pltpu.PrefetchScalarGridSpec(
            num_scalar_prefetch=0,
            grid=grid,
            in_specs=[
                pl.BlockSpec((bm, D), lambda i: (i, 0)),   # x tile (pipelined)
                resident,                                   # W1
                resident,                                   # b1 (f32)
                resident,                                   # W2
                resident,                                   # b2 (f32)
            ],
            out_specs=[
                pl.BlockSpec((bm, D), lambda i: (i, 0)),   # reconstructed tile
                pl.BlockSpec((bm, L), lambda i: (i, 0)),   # latent tile
            ],
        ),
        compiler_params=pltpu.CompilerParams(
            dimension_semantics=("parallel",),
            vmem_limit_bytes=vmem_limit,
        ),
        cost_estimate=cost,
    )(x, w1, b1, w2, b2)

    return rec, lat


def init_params(key, input_dim, latent_dim, dtype=jnp.float32):
    """torch.nn.Linear-style init: U[-1/sqrt(fan_in), +1/sqrt(fan_in)].
    Weights are returned pre-transposed: shape (in_features, out_features)."""
    k1, k2, k3, k4 = jax.random.split(key, 4)
    bnd1 = 1.0 / (input_dim ** 0.5)
    bnd2 = 1.0 / (latent_dim ** 0.5)
    w1 = jax.random.uniform(k1, (input_dim, latent_dim), dtype, -bnd1, bnd1)
    b1 = jax.random.uniform(k2, (1, latent_dim), dtype, -bnd1, bnd1)
    w2 = jax.random.uniform(k3, (latent_dim, input_dim), dtype, -bnd2, bnd2)
    b2 = jax.random.uniform(k4, (1, input_dim), dtype, -bnd2, bnd2)
    return w1, b1, w2, b2


if __name__ == "__main__":
    # Small, lane-dense shapes: D and L are multiples of 128 so both output
    # stores are full-lane; batch=512 gives a 2-step parallel grid.
    input_dim, latent_dim, batch = 256, 128, 512

    key = jax.random.PRNGKey(0)
    kx, kp = jax.random.split(key)
    x = jax.random.normal(kx, (batch, input_dim), jnp.float32)
    w1, b1, w2, b2 = init_params(kp, input_dim, latent_dim)

    # f32 path
    rec, lat = patch_autoencoder(x, w1, b1, w2, b2)
    jax.block_until_ready((rec, lat))

    hp = lax.Precision.HIGHEST
    lat_ref = jnp.maximum(jnp.dot(x, w1, precision=hp) + b1, 0.0)
    rec_ref = jax.nn.sigmoid(jnp.dot(lat_ref, w2, precision=hp) + b2)
    assert jnp.allclose(lat, lat_ref, atol=2e-3, rtol=2e-3), "latent mismatch (f32)"
    assert jnp.allclose(rec, rec_ref, atol=2e-3, rtol=2e-3), "reconstruction mismatch (f32)"

    # Ragged batch: partial last block is masked by Pallas (no jnp.pad, no slicing).
    rec_s, lat_s = patch_autoencoder(x[:100], w1, b1, w2, b2)
    jax.block_until_ready((rec_s, lat_s))
    assert jnp.allclose(lat_s, lat_ref[:100], atol=2e-3, rtol=2e-3), \
        "latent mismatch (ragged batch)"
    assert jnp.allclose(rec_s, rec_ref[:100], atol=2e-3, rtol=2e-3), \
        "reconstruction mismatch (ragged batch)"

    # bf16 I/O path: halves HBM traffic for this mem-bound kernel; MXU accumulation
    # stays f32 and biases stay f32.  (Note: returned latent is bf16-rounded while
    # the reconstruction is decoded from the f32 latent inside the kernel.)
    xb, w1b, w2b = (a.astype(jnp.bfloat16) for a in (x, w1, w2))
    rec_b, lat_b = patch_autoencoder(xb, w1b, b1, w2b, b2)
    jax.block_until_ready((rec_b, lat_b))
    assert jnp.allclose(lat_b.astype(jnp.float32), lat_ref, atol=8e-2, rtol=8e-2), \
        "latent mismatch (bf16)"
    assert jnp.allclose(rec_b.astype(jnp.float32), rec_ref, atol=4e-2), \
        "reconstruction mismatch (bf16)"

    print("KERNEL_OK")
</pallas_src>

<mosaic_0001>
module attributes {stable_mosaic.version = 11 : i64} {
  func.func @_autoencoder_kernel(%arg0: i32, %arg1: memref<256x256xf32, #tpu.memory_space<vmem>>, %arg2: memref<256x128xf32, #tpu.memory_space<vmem>>, %arg3: memref<1x128xf32, #tpu.memory_space<vmem>>, %arg4: memref<128x256xf32, #tpu.memory_space<vmem>>, %arg5: memref<1x256xf32, #tpu.memory_space<vmem>>, %arg6: memref<256x256xf32, #tpu.memory_space<vmem>>, %arg7: memref<256x128xf32, #tpu.memory_space<vmem>>) attributes {dimension_semantics = [#tpu.dimension_semantics<parallel>], iteration_bounds = array<i64: 2>, scalar_prefetch = 0 : i64, scratch_operands = 0 : i64, tpu.core_type = #tpu.core_type<tc>, window_params = [{transform_indices = @transform_0, window_bounds = array<i64: 256, 256>}, {pipeline_mode = #tpu.pipeline_mode<synchronous>, transform_indices = @transform_1, window_bounds = array<i64: 256, 128>}, {pipeline_mode = #tpu.pipeline_mode<synchronous>, transform_indices = @transform_2, window_bounds = array<i64: 1, 128>}, {pipeline_mode = #tpu.pipeline_mode<synchronous>, transform_indices = @transform_3, window_bounds = array<i64: 128, 256>}, {pipeline_mode = #tpu.pipeline_mode<synchronous>, transform_indices = @transform_4, window_bounds = array<i64: 1, 256>}, {transform_indices = @transform_5, window_bounds = array<i64: 256, 256>}, {transform_indices = @transform_6, window_bounds = array<i64: 256, 128>}]} {
    %c0 = arith.constant 0 : index
    %c0_0 = arith.constant 0 : index
    %0 = vector.load %arg1[%c0, %c0_0] : memref<256x256xf32, #tpu.memory_space<vmem>>, vector<256x256xf32>
    %c0_1 = arith.constant 0 : index
    %c0_2 = arith.constant 0 : index
    %1 = vector.load %arg2[%c0_1, %c0_2] : memref<256x128xf32, #tpu.memory_space<vmem>>, vector<256x128xf32>
    %cst = arith.constant dense<0.000000e+00> : vector<256x128xf32>
    %2 = tpu.matmul %0, %1, %cst {dimension_numbers = #tpu.dot_dimension_numbers<[1], [0], [0], [1], [0, 0, 1, 1], [], []>} : vector<256x256xf32>, vector<256x128xf32>, vector<256x128xf32> -> vector<256x128xf32>
    %c0_3 = arith.constant 0 : index
    %c0_4 = arith.constant 0 : index
    %3 = vector.load %arg3[%c0_3, %c0_4] : memref<1x128xf32, #tpu.memory_space<vmem>>, vector<1x128xf32>
    %4 = vector.broadcast %3 : vector<1x128xf32> to vector<256x128xf32>
    %5 = arith.addf %2, %4 : vector<256x128xf32>
    %cst_5 = arith.constant 0.000000e+00 : f32
    %6 = vector.broadcast %cst_5 : f32 to vector<256x128xf32>
    %7 = arith.maximumf %5, %6 : vector<256x128xf32>
    %c0_6 = arith.constant 0 : index
    %c0_7 = arith.constant 0 : index
    %8 = vector.load %arg7[%c0_6, %c0_7] : memref<256x128xf32, #tpu.memory_space<vmem>>, vector<256x128xf32>
    tpu.vector_store %arg7[%c0_6, %c0_7], %7 {strides = array<i32>} : memref<256x128xf32, #tpu.memory_space<vmem>>, vector<256x128xf32>,
    %c0_8 = arith.constant 0 : index
    %c0_9 = arith.constant 0 : index
    %9 = vector.load %arg4[%c0_8, %c0_9] : memref<128x256xf32, #tpu.memory_space<vmem>>, vector<128x256xf32>
    %cst_10 = arith.constant dense<0.000000e+00> : vector<256x256xf32>
    %10 = tpu.matmul %7, %9, %cst_10 {dimension_numbers = #tpu.dot_dimension_numbers<[1], [0], [0], [1], [0, 0, 1, 1], [], []>} : vector<256x128xf32>, vector<128x256xf32>, vector<256x256xf32> -> vector<256x256xf32>
    %c0_11 = arith.constant 0 : index
    %c0_12 = arith.constant 0 : index
    %11 = vector.load %arg5[%c0_11, %c0_12] : memref<1x256xf32, #tpu.memory_space<vmem>>, vector<1x256xf32>
    %12 = vector.broadcast %11 : vector<1x256xf32> to vector<256x256xf32>
    %13 = arith.addf %10, %12 : vector<256x256xf32>
    %14 = arith.negf %13 : vector<256x256xf32>
    %15 = math.exp %14 : vector<256x256xf32>
    %cst_13 = arith.constant 1.000000e+00 : f32
    %16 = vector.broadcast %cst_13 : f32 to vector<256x256xf32>
    %17 = arith.addf %16, %15 : vector<256x256xf32>
    %18 = arith.divf %16, %17 : vector<256x256xf32>
    %c0_14 = arith.constant 0 : index
    %c0_15 = arith.constant 0 : index
    %19 = vector.load %arg6[%c0_14, %c0_15] : memref<256x256xf32, #tpu.memory_space<vmem>>, vector<256x256xf32>
    tpu.vector_store %arg6[%c0_14, %c0_15], %18 {strides = array<i32>} : memref<256x256xf32, #tpu.memory_space<vmem>>, vector<256x256xf32>,
    return
  }
  func.func @transform_0(%arg0: i32) -> (i32, i32) {
    %c0_i32 = arith.constant 0 : i32
    %c0_i32_0 = arith.constant 0 : i32
    return %arg0, %c0_i32 : i32, i32
  }
  func.func @transform_1(%arg0: i32) -> (i32, i32) {
    %c0_i32 = arith.constant 0 : i32
    %c0_i32_0 = arith.constant 0 : i32
    %c0_i32_1 = arith.constant 0 : i32
    return %c0_i32, %c0_i32_0 : i32, i32
  }
  func.func @transform_2(%arg0: i32) -> (i32, i32) {
    %c0_i32 = arith.constant 0 : i32
    %c0_i32_0 = arith.constant 0 : i32
    %c0_i32_1 = arith.constant 0 : i32
    return %c0_i32, %c0_i32_0 : i32, i32
  }
  func.func @transform_3(%arg0: i32) -> (i32, i32) {
    %c0_i32 = arith.constant 0 : i32
    %c0_i32_0 = arith.constant 0 : i32
    %c0_i32_1 = arith.constant 0 : i32
    return %c0_i32, %c0_i32_0 : i32, i32
  }
  func.func @transform_4(%arg0: i32) -> (i32, i32) {
    %c0_i32 = arith.constant 0 : i32
    %c0_i32_0 = arith.constant 0 : i32
    %c0_i32_1 = arith.constant 0 : i32
    return %c0_i32, %c0_i32_0 : i32, i32
  }
  func.func @transform_5(%arg0: i32) -> (i32, i32) {
    %c0_i32 = arith.constant 0 : i32
    %c0_i32_0 = arith.constant 0 : i32
    return %arg0, %c0_i32 : i32, i32
  }
  func.func @transform_6(%arg0: i32) -> (i32, i32) {
    %c0_i32 = arith.constant 0 : i32
    %c0_i32_0 = arith.constant 0 : i32
    return %arg0, %c0_i32 : i32, i32
  }
}

</mosaic_0001>

<bundles_post_ra>
// kernel: tpu_custom_call.1
= control target key start
LH: loop header
LB: loop body
LE: loop exit
PB: predicated region body
PF: predicated region fallthrough
CT: control target
= control target key end

     0   :  { %12 = vsyncpa [#allocation3], 0  ;;  %s2968_s0 = inlined_call_operand.hbm [shape: f32[512,256], index: 0, kind: input, shape index: {}]   ;;  %s2969_s1 = inlined_call_operand.hbm [shape: f32[256,128], index: 1, kind: input, shape index: {}]   ;;  %s2970_s2 = inlined_call_operand.vmem [shape: f32[1,128], index: 2, kind: input, shape index: {}]   ;;  %s2971_s3 = inlined_call_operand.hbm [shape: f32[128,256], index: 3, kind: input, shape index: {}]   ;;  %s2972_s4 = inlined_call_operand.vmem [shape: f32[1,256], index: 4, kind: input, shape index: {}]   ;;  %s2973_s5 = inlined_call_operand.hbm [shape: f32[512,256], index: 5, kind: output, shape index: {0}]   ;;  %s2974_s6 = inlined_call_operand.hbm [shape: f32[512,128], index: 6, kind: output, shape index: {1}]  }
   0x1   :  { %14 = vsyncpa [#allocation3 + $0x1], 0 }
   0x2   :  { %15 = vsyncpa [#allocation6], 0 }
   0x3   :  { %16 = vsyncpa [#allocation4], 0 }
   0x4   :  { %18 = vsyncpa [#allocation4 + $0x1], 0 }
   0x5   :  { %19 = vsyncpa [#allocation10], 0 }
   0x6   :  { %21 = vsyncpa [#allocation10 + $0x1], 0  ;;  %s2367_s21 = smov 0   ;;  %s2369_s22 = smov 0  }
   0x7   :  { %s2371_s23 = smov 0   ;;  %s2373_s24 = smov 0  }
   0x8 LB: > { %s2388_s25 = sadd.s32 4294967295, %s2315_s24   ;;  %s1615_s26 = sadd.s32 4294967294, %s2315_s24   ;;  %s2315_s24 = sphi %s2373_s24, %s2994_s24   ;;  %s2311_s23 = sphi %s2371_s23, %s2993_s23   ;;  %s2307_s22 = sphi %s2369_s22, %s2992_s22   ;;  %s2303_s21 = sphi %s2367_s21, %s2991_s21  }
   0x9   : > { %p47_p0 = scmp.ne.s32.totalorder %s2307_s22, %s2303_s21  ;;  %p2975_p1 = scmp.eq.s32.totalorder %s2388_s25, 0 }
   0xa   : > { %p161_p3 = scmp.eq.s32.totalorder %s1615_s26, 1  ;;  %p1616_p5 = scmp.ge.s32.totalorder %s2315_s24, 1 }
   0xb   : > { %p2397_p4 = por %p2975_p1, %p47_p0  ;;  %p194_p7 = scmp.lt.s32.totalorder %s2315_s24, 3 }
   0xc   : > { %p2402_p6 = por %p161_p3, %p47_p0  ;;  %s2317_s30 = smov [#allocation5]  }
   0xd   : > { %s2978_s27 = scalar_select %p2397_p4, 1, 0 }
   0xe   : > { %s2979_s28 = scalar_select %p2402_p6, 1, 0 }
   0xf   : > { %p2407_p8 = pnand %p1616_p5, %p194_p7  ;;  %s206_s7 = sshll.u32 %s2317_s30, 4  ;;  %s2411_s7 = int_to_ptr.vmem [resolvable:$true] %s206_s7 }
  0x10   : > { %s2318_s9 = smov [#allocation7]   ;;  %s2127_s13 = scalar_lea.hbm %s2969_s1, 4096 }
  0x11   : > { %p1803_p9 = pneg %p2407_p8  ;;  %s222_s10 = sshll.u32 %s2318_s9, 4  ;;  %s2422_s10 = int_to_ptr.vmem [resolvable:$true] %s222_s10 }
  0x12   : > { %p2128_p12 = scmp.ne.s32.totalorder %s2969_s1, %s2127_s13  ;;  %p2134_p5 = scmp.lt.u32.totalorder %s2127_s13, %s2969_s1 }
  0x13   : > { %p2418_p11 = pnand %p1803_p9, %p2975_p1 }
  0x15   : > { %p2129_p13 = pneg %p2418_p11 }
  0x17   : > { %p2130_p0 = pnand %p2129_p13, %p2128_p12 }
  0x19   : > { %p2131_p3 = pneg %p2130_p0 }
  0x1b   : > { %p2136_p7 = pnand %p2134_p5, %p2131_p3 }
  0x1d   : > { %2139 = shalt.err (!%p2136_p7)
}
  0x1e   : > { %s2140_s18 = scalar_lea.vmem %s2411_s7, 4096  ;;  %p2148_p2 = scmp.lt.s32.totalorder %s2411_s7, %s2411_s7 }
  0x1f   : > { %p2141_p9 = scmp.ne.s32.totalorder %s2411_s7, %s2140_s18  ;;  %p2149_p12 = scmp.lt.s32.totalorder %s2140_s18, %s2140_s18 }
  0x21   : > { %p2143_p10 = pnand %p2141_p9, %p2129_p13  ;;  %p2150_p0 = por %p2149_p12, %p2148_p2 }
  0x23   : > { %p2144_p1 = pneg %p2143_p10 }
  0x25   : > { %p2151_p6 = pnand %p2150_p0, %p2144_p1 }
  0x27   : > { %2154 = shalt.err (!%p2151_p6)
}
  0x28   : > { %s2319_s19 = smov 128   ;;  %s2320_s20 = smov 8  }
  0x29   : > { %1806 = dma.hbm_to_vmem [thread:$0]  (!%p2418_p11), %s2969_s1, 4096, %s2411_s7, [#allocation6], %s2319_s19, %s2319_s19, %s2320_s20  }
  0x2a   : > { %s2155_s12 = scalar_lea.hbm %s2971_s3, 4096 }
  0x2b   : > { %p2156_p2 = scmp.ne.s32.totalorder %s2971_s3, %s2155_s12  ;;  %p2162_p10 = scmp.lt.u32.totalorder %s2155_s12, %s2971_s3 }
  0x2d   : > { %p2158_p1 = pnand %p2156_p2, %p2129_p13 }
  0x2f   : > { %p2159_p6 = pneg %p2158_p1 }
  0x31   : > { %p2164_p3 = pnand %p2162_p10, %p2159_p6 }
  0x33   : > { %2167 = shalt.err (!%p2164_p3)
}
  0x34   : > { %s2168_s7 = scalar_lea.vmem %s2422_s10, 4096  ;;  %p2176_p12 = scmp.lt.s32.totalorder %s2422_s10, %s2422_s10 }
  0x35   : > { %p2169_p5 = scmp.ne.s32.totalorder %s2422_s10, %s2168_s7  ;;  %p2177_p0 = scmp.lt.s32.totalorder %s2168_s7, %s2168_s7 }
  0x37   : > { %p2171_p7 = pnand %p2169_p5, %p2129_p13  ;;  %p2178_p2 = por %p2177_p0, %p2176_p12 }
  0x39   : > { %p2172_p9 = pneg %p2171_p7 }
  0x3b   : > { %p2179_p1 = pnand %p2178_p2, %p2172_p9 }
  0x3d   : > { %2182 = shalt.err (!%p2179_p1)
}
  0x3e   : > { %s2321_s17 = smov 256   ;;  %s2322_s18 = smov 16  }
  0x3f   : > { %1809 = dma.hbm_to_vmem [thread:$0]  (!%p2418_p11), %s2971_s3, 4096, %s2422_s10, [#allocation6], %s2321_s17, %s2321_s17, %s2322_s18  }
  0x40   : > { %s2480_s26 = sadd.s32 1, %s2315_s24   ;;  %s34_s9 = sadd.s32 1, %s2311_s23 }
  0x41   : > { %s31_s30 = ssub.s32 %s2315_s24, %s2480_s26  ;;  %p41_p6 = scmp.ne.s32.totalorder %s2311_s23, %s2307_s22 }
  0x42   : > { %p32_p13 = scmp.eq.s32.totalorder %s31_s30, 0  ;;  %p42_p10 = scmp.eq.s32.totalorder %s2315_s24, 0 }
  0x43   : > { %p2982_p5 = scmp.eq.s32.totalorder %s2388_s25, 1  ;;  %p1823_p9 = scmp.lt.s32.totalorder %s2315_s24, 2 }
  0x44   : > { %s2489_s11 = scalar_select %p32_p13, %s2311_s23, %s34_s9  }
  0x45   : > { %p43_p3 = por %p42_p10, %p41_p6  ;;  %p2493_p7 = por %p2982_p5, %p41_p6 }
  0x46   : > { %s239_s12 = sand.u32 1, %s2311_s23   ;;  %s1705_s10 = sshll.u32 %s2315_s24, 13 }
  0x47   : > { %s2983_s8 = scalar_select %p2493_p7, 1, 0 }
  0x48   : > { %s1620_s13 = sshll.u32 %s239_s12, 9  ;;  %s2503_s16 = scalar_lea.hbm %s2968_s0, %s1705_s10 }
  0x49   : > { %s243_s7 = scalar_lea.vmem [#allocation2], %s1620_s13  ;;  %p2507_p11 = pnand %p1823_p9, %p43_p3 }
  0x4a   : > { %s251_s19 = sshll.u32 %s243_s7, 4  ;;  %s2511_s30 = scalar_lea.sflag [#allocation3], %s239_s12  ;;  %s2505_s19 = int_to_ptr.vmem [resolvable:$true] %s251_s19 }
  0x4b   : > { %s2183_s9 = scalar_lea.hbm %s2503_s16, 8192  ;;  %p2185_p0 = pneg %p2507_p11 }
  0x4c   : > { %p2184_p12 = scmp.ne.s32.totalorder %s2503_s16, %s2183_s9  ;;  %s2188_s14 = scalar_lea.hbm %s2968_s0, 16384 }
  0x4d   : > { %p2189_p13 = scmp.lt.u32.totalorder %s2503_s16, %s2968_s0  ;;  %p2190_p6 = scmp.lt.u32.totalorder %s2188_s14, %s2183_s9 }
  0x4e   : > { %p2186_p2 = pnand %p2185_p0, %p2184_p12  ;;  %p2192_p3 = scmp.lt.u32.totalorder %s2183_s9, %s2503_s16 }
  0x4f   : > { %p2191_p10 = por %p2190_p6, %p2189_p13 }
  0x50   : > { %p2187_p1 = pneg %p2186_p2 }
  0x51   : > { %p2193_p5 = por %p2192_p3, %p2191_p10 }
  0x53   : > { %p2194_p9 = pnand %p2193_p5, %p2187_p1 }
  0x55   : > { %2197 = shalt.err (!%p2194_p9)
}
  0x56   : > { %s2198_s12 = scalar_lea.vmem %s2505_s19, 8192  ;;  %s2323_s13 = smov [#allocation2]  }
  0x57   : > { %p2199_p12 = scmp.ne.s32.totalorder %s2505_s19, %s2198_s12  ;;  %s2203_s10 = sshll.u32 %s2323_s13, 4  ;;  %s2204_s10 = int_to_ptr.vmem [resolvable:$false] %s2203_s10 }
  0x58   : > { %s2205_s15 = scalar_lea.vmem %s2204_s10, 16384  ;;  %p2206_p4 = scmp.lt.s32.totalorder %s2505_s19, %s2204_s10 }
  0x59   : > { %p2201_p2 = pnand %p2199_p12, %p2185_p0  ;;  %p2207_p13 = scmp.lt.s32.totalorder %s2205_s15, %s2198_s12 }
  0x5b   : > { %p2202_p7 = pneg %p2201_p2  ;;  %p2208_p6 = por %p2207_p13, %p2206_p4 }
  0x5d   : > { %p2209_p10 = pnand %p2208_p6, %p2202_p7 }
  0x5f   : > { %2212 = shalt.err (!%p2209_p10)
}
  0x60   : > { %1813 = dma.hbm_to_vmem [thread:$0]  (!%p2507_p11), %s2503_s16, 8192, %s2505_s19, %s2511_s30, %s2321_s17, %s2321_s17, %s2322_s18  }
  0x61   : > { %263 = sbr.rel (%p2407_p8) target bundleno = 784 (0x310), region = 40  ;;  %s2545_s9 = sand.u32 (!%p2407_p8), 1, %s2307_s22  }
  0x62   : > { %s1625_s14 = sshll.u32 (!%p2407_p8), %s2545_s9, 9  ;;  %s266_s7 = scalar_lea.sflag (!%p2407_p8), [#allocation3], %s2545_s9 }
  0x63   : > { %s2551_s20 = scalar_lea.vmem (!%p2407_p8), [#allocation2], %s1625_s14  ;;  %p2985_p4 = scmp.ne.s32.totalorder (!%p2407_p8), %s2978_s27, 0 }
  0x68   : > { %2286 = dma.done.wait (%p2985_p4), %s266_s7, 8192  }
  0x69   : > { %2288 = vsyncadd (%p2985_p4), %s266_s7, 4294959104  ;;  %p2986_p7 = scmp.eq.s32.totalorder %s2388_s25, 0 }
  0x6b   : > { %2290 = dma.done.wait (%p2986_p7), [#allocation6], 8192   ;;  %p2987_p8 = pmov %p2986_p7 }
  0x6c   : > { %v2324_v0 = vmov 0.0|0.0   ;;  %v378_v1 = vld [vmem:[#allocation5] sm:$0xff]  ;;  %v379_v2 = vld [vmem:[#allocation5 + $0x8] sm:$0xff]  ;;  %v380_v3 = vld [vmem:[#allocation5 + $0x10] sm:$0xff]  ;;  %s1629_s17 = sshll.u32 %s2545_s9, 8  ;;  %s2768_s30 = scalar_lea.vmem [#allocation8], %s1625_s14 }
  0x6d   : > { %2292 = vsyncadd (%p2987_p8), [#allocation6], 4294959104  ;;  %1709 = vmatprep.subr.bf16.mxu0 %v2324_v0  ;;  %v1710_v4 = vpack.c.bf16 %v379_v2, %v378_v1  ;;  %v381_v5 = vld [vmem:[#allocation5 + $0x18] sm:$0xff]  ;;  %v382_v7 = vld [vmem:[#allocation5 + $0x20] sm:$0xff]  ;;  %s2649_s18 = scalar_lea.vmem [#allocation9], %s1629_s17  ;;  %s1708_s12 = sshll.u32 %s2388_s25, 12 }
  0x6e   : > { %v1713_v6 = vpack.c.bf16 %v381_v5, %v380_v3  ;;  %v383_v8 = vld [vmem:[#allocation5 + $0x28] sm:$0xff]  ;;  %v384_v10 = vld [vmem:[#allocation5 + $0x30] sm:$0xff]  ;;  %v385_v11 = vld [vmem:[#allocation5 + $0x38] sm:$0xff]  ;;  %s1491_s13 = sshll.u32 %s2649_s18, 4  ;;  %s2781_s14 = scalar_lea.hbm %s2974_s6, %s1708_s12  ;;  %s2783_s13 = int_to_ptr.vmem [resolvable:$true] %s1491_s13 }
  0x6f   : > { %1711 = vmatpush1.bf16.msra.mxu0 %v1710_v4  ;;  %v1716_v9 = vpack.c.bf16 %v383_v8, %v382_v7  ;;  %v315_v12 = vld [vmem:[%s2551_s20 + $0x8] sm:$0xff]  ;;  %v1719_v13 = vpack.c.bf16 %v385_v11, %v384_v10  ;;  %v386_v14 = vld [vmem:[#allocation5 + $0x40] sm:$0xff]  ;;  %v388_v17 = vld [vmem:[#allocation5 + $0x50] sm:$0xff]  ;;  %s1461_s7 = scalar_lea.sflag [#allocation10], %s2545_s9  ;;  %p2988_p0 = scmp.ne.s32.totalorder %s2983_s8, 0 }
  0x70   : > { %1712 = vmatprep.subr.bf16.mxu0 %v2324_v0  ;;  %481 = vmatprep.mubr.f32.mxu0 %v315_v12  ;;  %v387_v15 = vld [vmem:[#allocation5 + $0x48] sm:$0xff]  ;;  %v389_v18 = vld [vmem:[#allocation5 + $0x58] sm:$0xff]  ;;  %v390_v20 = vld [vmem:[#allocation5 + $0x60] sm:$0xff]  ;;  %s2326_s27 = smov [#allocation9]  }
  0x71   : > { %v1722_v16 = vpack.c.bf16 %v387_v15, %v386_v14  ;;  %v1725_v19 = vpack.c.bf16 %v389_v18, %v388_v17  ;;  %v391_v21 = vld [vmem:[#allocation5 + $0x68] sm:$0xff]  ;;  %v392_v23 = vld [vmem:[#allocation5 + $0x70] sm:$0xff]  ;;  %v393_v24 = vld [vmem:[#allocation5 + $0x78] sm:$0xff]  ;;  %s2217_s29 = sshll.u32 %s2326_s27, 4  ;;  %s2218_s29 = int_to_ptr.vmem [resolvable:$false] %s2217_s29 }
  0x72   : > { %v1728_v22 = vpack.c.bf16 %v391_v21, %v390_v20  ;;  %v1731_v25 = vpack.c.bf16 %v393_v24, %v392_v23  ;;  %v394_v26 = vld [vmem:[#allocation5 + $0x80] sm:$0xff]  ;;  %v395_v27 = vld [vmem:[#allocation5 + $0x88] sm:$0xff]  ;;  %v396_v29 = vld [vmem:[#allocation5 + $0x90] sm:$0xff]  ;;  %s2219_s17 = scalar_lea.vmem %s2218_s29, 8192  ;;  %p2220_p5 = scmp.lt.s32.totalorder %s2783_s13, %s2218_s29 }
  0x73   : > { %1714 = vmatpush1.bf16.msra.mxu0 %v1713_v6  ;;  %v1734_v28 = vpack.c.bf16 %v395_v27, %v394_v26  ;;  %v397_v30 = vld [vmem:[#allocation5 + $0x98] sm:$0xff]  ;;  %v398_v32 = vld [vmem:[#allocation5 + $0xa0] sm:$0xff]  ;;  %v399_v33 = vld [vmem:[#allocation5 + $0xa8] sm:$0xff] }
  0x74   : > { %1715 = vmatprep.subr.bf16.mxu0 %v2324_v0  ;;  %v1737_v31 = vpack.c.bf16 %v397_v30, %v396_v29  ;;  %v1740_v34 = vpack.c.bf16 %v399_v33, %v398_v32  ;;  %v400_v35 = vld [vmem:[#allocation5 + $0xb0] sm:$0xff]  ;;  %v401_v36 = vld [vmem:[#allocation5 + $0xb8] sm:$0xff]  ;;  %v402_v38 = vld [vmem:[#allocation5 + $0xc0] sm:$0xff] }
  0x75   : > { %v1743_v37 = vpack.c.bf16 %v401_v36, %v400_v35  ;;  %v403_v39 = vld [vmem:[#allocation5 + $0xc8] sm:$0xff]  ;;  %v404_v41 = vld [vmem:[#allocation5 + $0xd0] sm:$0xff]  ;;  %v405_v42 = vld [vmem:[#allocation5 + $0xd8] sm:$0xff] }
  0x76   : > { %v1746_v40 = vpack.c.bf16 %v403_v39, %v402_v38  ;;  %v1749_v43 = vpack.c.bf16 %v405_v42, %v404_v41  ;;  %v406_v44 = vld [vmem:[#allocation5 + $0xe0] sm:$0xff]  ;;  %v407_v45 = vld [vmem:[#allocation5 + $0xe8] sm:$0xff]  ;;  %v408_v47 = vld [vmem:[#allocation5 + $0xf0] sm:$0xff] }
  0x77   : > { %1717 = vmatpush1.bf16.msra.mxu0 %v1716_v9  ;;  %v1752_v46 = vpack.c.bf16 %v407_v45, %v406_v44  ;;  %v409_v48 = vld [vmem:[#allocation5 + $0xf8] sm:$0xff]  ;;  %v314_v50 = vld [vmem:[%s2551_s20] sm:$0xff]  ;;  %v707_v52 = vld [vmem:[#allocation7 + $0x8] sm:$0xff] }
  0x78   : > { %1718 = vmatprep.subr.bf16.mxu0 %v2324_v0  ;;  %v1755_v49 = vpack.c.bf16 %v409_v48, %v408_v47  ;;  %v317_v51 = vld [vmem:[%s2551_s20 + $0x18] sm:$0xff]  ;;  %v706_v54 = vld [vmem:[#allocation7] sm:$0xff]  ;;  %v708_v56 = vld [vmem:[#allocation7 + $0x10] sm:$0xff] }
  0x79   : > { %v709_v53 = vld [vmem:[#allocation7 + $0x18] sm:$0xff]  ;;  %v711_v57 = vld [vmem:[#allocation7 + $0x28] sm:$0xff]  ;;  %v1759_v59 = vpack.c.bf16 %v708_v56, %v706_v54  ;;  %v710_v61 = vld [vmem:[#allocation7 + $0x20] sm:$0xff] }
  0x7a   : > { %v1757_v55 = vpack.c.bf16 %v709_v53, %v707_v52  ;;  %v713_v58 = vld [vmem:[#allocation7 + $0x38] sm:$0xff]  ;;  %v712_v62 = vld [vmem:[#allocation7 + $0x30] sm:$0xff]  ;;  %v715_v63 = vld [vmem:[#allocation7 + $0x48] sm:$0xff] }
  0x7b   : > { %1720 = vmatpush1.bf16.msra.mxu0 %v1719_v13  ;;  %v1761_v60 = vpack.c.bf16 %v713_v58, %v711_v57  ;;  %v717_v1 = vld [vmem:[#allocation7 + $0x58] sm:$0xff]  ;;  %v316_v2 = vld [vmem:[%s2551_s20 + $0x10] sm:$0xff]  ;;  %v714_v4 = vld [vmem:[#allocation7 + $0x40] sm:$0xff] }
  0x7c   : > { %1721 = vmatprep.subr.bf16.mxu0 %v2324_v0  ;;  %1758 = vmatprep.subr.bf16.mxu1 %v1757_v55  ;;  %v1765_v3 = vpack.c.bf16 %v717_v1, %v715_v63  ;;  %v716_v5 = vld [vmem:[#allocation7 + $0x50] sm:$0xff]  ;;  %v319_v6 = vld [vmem:[%s2551_s20 + $0x28] sm:$0xff]  ;;  %v721_v8 = vld [vmem:[#allocation7 + $0x78] sm:$0xff] }
  0x7d   : > { %1760 = vmatpush1.bf16.msra.mxu1 %v1759_v59  ;;  %v719_v7 = vld [vmem:[#allocation7 + $0x68] sm:$0xff]  ;;  %v1767_v9 = vpack.c.bf16 %v716_v5, %v714_v4  ;;  %v318_v10 = vld [vmem:[%s2551_s20 + $0x20] sm:$0xff]  ;;  %v720_v13 = vld [vmem:[#allocation7 + $0x70] sm:$0xff] }
  0x7e   : > { %1762 = vmatprep.subr.bf16.mxu1 %v1761_v60  ;;  %v1769_v11 = vpack.c.bf16 %v721_v8, %v719_v7  ;;  %v718_v12 = vld [vmem:[#allocation7 + $0x60] sm:$0xff]  ;;  %v321_v14 = vld [vmem:[%s2551_s20 + $0x38] sm:$0xff]  ;;  %v723_v15 = vld [vmem:[#allocation7 + $0x88] sm:$0xff] }
  0x7f   : > { %1723 = vmatpush1.bf16.msra.mxu0 %v1722_v16  ;;  %v725_v16 = vld [vmem:[#allocation7 + $0x98] sm:$0xff]  ;;  %v1771_v17 = vpack.c.bf16 %v720_v13, %v718_v12  ;;  %v320_v18 = vld [vmem:[%s2551_s20 + $0x30] sm:$0xff]  ;;  %v722_v20 = vld [vmem:[#allocation7 + $0x80] sm:$0xff] }
  0x80   : > { %1724 = vmatprep.subr.bf16.mxu0 %v2324_v0  ;;  %v724_v21 = vld [vmem:[#allocation7 + $0x90] sm:$0xff]  ;;  %v727_v23 = vld [vmem:[#allocation7 + $0xa8] sm:$0xff]  ;;  %v729_v24 = vld [vmem:[#allocation7 + $0xb8] sm:$0xff] }
  0x81   : > { %v322_v26 = vld [vmem:[%s2551_s20 + $0x40] sm:$0xff]  ;;  %v1777_v27 = vpack.c.bf16 %v729_v24, %v727_v23  ;;  %v728_v29 = vld [vmem:[#allocation7 + $0xb0] sm:$0xff]  ;;  %v325_v30 = vld [vmem:[%s2551_s20 + $0x58] sm:$0xff] }
  0x82   : > { %v733_v32 = vld [vmem:[#allocation7 + $0xd8] sm:$0xff]  ;;  %v730_v36 = vld [vmem:[#allocation7 + $0xc0] sm:$0xff]  ;;  %v327_v38 = vld [vmem:[%s2551_s20 + $0x68] sm:$0xff] }
  0x83   : > { %1726 = vmatpush1.bf16.msra.mxu0 %v1725_v19  ;;  %v1773_v19 = vpack.c.bf16 %v725_v16, %v723_v15  ;;  %v329_v41 = vld [vmem:[%s2551_s20 + $0x78] sm:$0xff]  ;;  %v328_v42 = vld [vmem:[%s2551_s20 + $0x70] sm:$0xff]  ;;  %v330_v44 = vld [vmem:[%s2551_s20 + $0x80] sm:$0xff]  ;;  %v2325_v16 = vmov 0.0  }
  0x84   : > { %1727 = vmatprep.subr.bf16.mxu0 %v2324_v0  ;;  %v333_v45 = vld [vmem:[%s2551_s20 + $0x98] sm:$0xff]  ;;  %v335_v47 = vld [vmem:[%s2551_s20 + $0xa8] sm:$0xff]  ;;  %v334_v48 = vld [vmem:[%s2551_s20 + $0xa0] sm:$0xff]  ;;  %814 = vmatprep.mubr.f32.mxu1 %v2325_v16 }
  0x85   : > { %v338_v52 = vld [vmem:[%s2551_s20 + $0xc0] sm:$0xff]  ;;  %v341_v53 = vld [vmem:[%s2551_s20 + $0xd8] sm:$0xff]  ;;  %v340_v54 = vld [vmem:[%s2551_s20 + $0xd0] sm:$0xff] }
  0x86   : > { %v343_v55 = vld [vmem:[%s2551_s20 + $0xe8] sm:$0xff]  ;;  %v342_v56 = vld [vmem:[%s2551_s20 + $0xe0] sm:$0xff]  ;;  %v345_v57 = vld [vmem:[%s2551_s20 + $0xf8] sm:$0xff] }
  0x87   : > { %1729 = vmatpush1.bf16.msra.mxu0 %v1728_v22  ;;  %v323_v22 = vld [vmem:[%s2551_s20 + $0x48] sm:$0xff]  ;;  %v344_v58 = vld [vmem:[%s2551_s20 + $0xf0] sm:$0xff]  ;;  %v346_v60 = vld [vmem:[%s2551_s20 + $0x100] sm:$0xff] }
  0x88   : > { %1730 = vmatprep.subr.bf16.mxu0 %v2324_v0  ;;  %v347_v59 = vld [vmem:[%s2551_s20 + $0x108] sm:$0xff]  ;;  %v350_v1 = vld [vmem:[%s2551_s20 + $0x120] sm:$0xff]  ;;  %v357_v5 = vld [vmem:[%s2551_s20 + $0x158] sm:$0xff] }
  0x89   : > { %v351_v63 = vld [vmem:[%s2551_s20 + $0x128] sm:$0xff]  ;;  %v354_v4 = vld [vmem:[%s2551_s20 + $0x140] sm:$0xff]  ;;  %v737_v8 = vld [vmem:[#allocation7 + $0xf8] sm:$0xff] }
  0x8a   : > { %v735_v7 = vld [vmem:[#allocation7 + $0xe8] sm:$0xff]  ;;  %v736_v12 = vld [vmem:[#allocation7 + $0xf0] sm:$0xff]  ;;  %v361_v15 = vld [vmem:[%s2551_s20 + $0x178] sm:$0xff] }
  0x8b   : > { %1732 = vmatpush1.bf16.msra.mxu0 %v1731_v25  ;;  %v1775_v25 = vpack.c.bf16 %v724_v21, %v722_v20  ;;  %v365_v20 = vld [vmem:[%s2551_s20 + $0x198] sm:$0xff]  ;;  %v364_v21 = vld [vmem:[%s2551_s20 + $0x190] sm:$0xff]  ;;  %v366_v23 = vld [vmem:[%s2551_s20 + $0x1a0] sm:$0xff] }
  0x8c   : > { %1733 = vmatprep.subr.bf16.mxu0 %v2324_v0  ;;  %v369_v24 = vld [vmem:[%s2551_s20 + $0x1b8] sm:$0xff] }
  0x8f   : > { %1735 = vmatpush1.bf16.msra.mxu0 %v1734_v28  ;;  %v726_v28 = vld [vmem:[#allocation7 + $0xa0] sm:$0xff] }
  0x90   : > { %1736 = vmatprep.subr.bf16.mxu0 %v2324_v0  ;;  %v1779_v33 = vpack.c.bf16 %v728_v29, %v726_v28  ;;  %v373_v28 = vld [vmem:[%s2551_s20 + $0x1d8] sm:$0xff]  ;;  %v372_v29 = vld [vmem:[%s2551_s20 + $0x1d0] sm:$0xff] }
  0x93   : > { %1738 = vmatpush1.bf16.msra.mxu0 %v1737_v31  ;;  %v731_v31 = vld [vmem:[#allocation7 + $0xc8] sm:$0xff] }
  0x94   : > { %1739 = vmatprep.subr.bf16.mxu0 %v2324_v0  ;;  %v1781_v35 = vpack.c.bf16 %v733_v32, %v731_v31  ;;  %v374_v31 = vld [vmem:[%s2551_s20 + $0x1e0] sm:$0xff]  ;;  %v377_v32 = vld [vmem:[%s2551_s20 + $0x1f8] sm:$0xff] }
  0x97   : > { %1741 = vmatpush1.bf16.msra.mxu0 %v1740_v34  ;;  %v324_v34 = vld [vmem:[%s2551_s20 + $0x50] sm:$0xff] }
  0x98   : > { %1742 = vmatprep.subr.bf16.mxu0 %v2324_v0 }
  0x9b   : > { %1744 = vmatpush1.bf16.msra.mxu0 %v1743_v37  ;;  %v732_v37 = vld [vmem:[#allocation7 + $0xd0] sm:$0xff] }
  0x9c   : > { %1745 = vmatprep.subr.bf16.mxu0 %v2324_v0  ;;  %v1783_v39 = vpack.c.bf16 %v732_v37, %v730_v36 }
  0x9f   : > { %1747 = vmatpush1.bf16.msra.mxu0 %v1746_v40  ;;  %v326_v40 = vld [vmem:[%s2551_s20 + $0x60] sm:$0xff] }
  0xa0   : > { %1748 = vmatprep.subr.bf16.mxu0 %v2324_v0 }
  0xa3   : > { %1750 = vmatpush1.bf16.msra.mxu0 %v1749_v43  ;;  %v331_v43 = vld [vmem:[%s2551_s20 + $0x88] sm:$0xff] }
  0xa4   : > { %1751 = vmatprep.subr.bf16.mxu0 %v2324_v0 }
  0xa7   : > { %1753 = vmatpush1.bf16.msra.mxu0 %v1752_v46  ;;  %v332_v46 = vld [vmem:[%s2551_s20 + $0x90] sm:$0xff] }
  0xa8   : > { %1754 = vmatprep.subr.bf16.mxu0 %v2324_v0  ;;  %v1763_v0 = vpack.c.bf16 %v712_v62, %v710_v61  ;;  %v349_v61 = vld [vmem:[%s2551_s20 + $0x118] sm:$0xff]  ;;  %v348_v62 = vld [vmem:[%s2551_s20 + $0x110] sm:$0xff] }
  0xaa   : > { %1764 = vmatpush1.bf16.msra.mxu1 %v1763_v0  ;;  %v353_v0 = vld [vmem:[%s2551_s20 + $0x138] sm:$0xff] }
  0xab   : > { %1756 = vmatpush1.bf16.msra.mxu0 %v1755_v49  ;;  %1766 = vmatprep.subr.bf16.mxu1 %v1765_v3  ;;  %v337_v49 = vld [vmem:[%s2551_s20 + $0xb8] sm:$0xff]  ;;  %v355_v3 = vld [vmem:[%s2551_s20 + $0x148] sm:$0xff] }
  0xae   : > { %482 = vmatmul.mubr.f32.vlgmr.msra.gmra.mrb[0].mxu0 %v314_v50  ;;  %1768 = vmatpush1.bf16.msra.mxu1 %v1767_v9  ;;  %v336_v50 = vld [vmem:[%s2551_s20 + $0xb0] sm:$0xff]  ;;  %v359_v9 = vld [vmem:[%s2551_s20 + $0x168] sm:$0xff] }
  0xaf   : > { %486 = vmatprep.mubr.f32.mxu0 %v317_v51  ;;  %1770 = vmatprep.subr.bf16.mxu1 %v1769_v11  ;;  %v339_v51 = vld [vmem:[%s2551_s20 + $0xc8] sm:$0xff]  ;;  %v734_v11 = vld [vmem:[#allocation7 + $0xe0] sm:$0xff] }
  0xb0   : > { %v1787_v13 = vpack.c.bf16 %v736_v12, %v734_v11 }
  0xb2   : > { %487 = vmatmul.mubr.f32.gmra.mrb[2].mxu0 %v316_v2  ;;  %1772 = vmatpush1.bf16.msra.mxu1 %v1771_v17  ;;  %v352_v2 = vld [vmem:[%s2551_s20 + $0x130] sm:$0xff] }
  0xb3   : > { %491 = vmatprep.mubr.f32.mxu0 %v319_v6  ;;  %1774 = vmatprep.subr.bf16.mxu1 %v1773_v19  ;;  %v356_v6 = vld [vmem:[%s2551_s20 + $0x150] sm:$0xff]  ;;  %v362_v19 = vld [vmem:[%s2551_s20 + $0x180] sm:$0xff] }
  0xb4   : > { %v360_v17 = vld [vmem:[%s2551_s20 + $0x170] sm:$0xff] }
  0xb6   : > { %492 = vmatmul.mubr.f32.gmra.mrb[4].mxu0 %v318_v10  ;;  %1776 = vmatpush1.bf16.msra.mxu1 %v1775_v25  ;;  %v1785_v10 = vpack.c.bf16 %v737_v8, %v735_v7  ;;  %v368_v25 = vld [vmem:[%s2551_s20 + $0x1b0] sm:$0xff] }
  0xb7   : > { %496 = vmatprep.mubr.f32.mxu0 %v321_v14  ;;  %1778 = vmatprep.subr.bf16.mxu1 %v1777_v27  ;;  %v358_v14 = vld [vmem:[%s2551_s20 + $0x160] sm:$0xff] }
  0xb8   : > { %v370_v27 = vld [vmem:[%s2551_s20 + $0x1c0] sm:$0xff] }
  0xba   : > { %497 = vmatmul.mubr.f32.gmra.mrb[6].mxu0 %v320_v18  ;;  %1780 = vmatpush1.bf16.msra.mxu1 %v1779_v33  ;;  %v363_v18 = vld [vmem:[%s2551_s20 + $0x188] sm:$0xff]  ;;  %v376_v33 = vld [vmem:[%s2551_s20 + $0x1f0] sm:$0xff] }
  0xbb   : > { %501 = vmatprep.mubr.f32.mxu0 %v323_v22  ;;  %1782 = vmatprep.subr.bf16.mxu1 %v1781_v35  ;;  %v367_v22 = vld [vmem:[%s2551_s20 + $0x1a8] sm:$0xff] }
  0xbe   : > { %502 = vmatmul.mubr.f32.gmra.mrb[8].mxu0 %v322_v26  ;;  %1784 = vmatpush1.bf16.msra.mxu1 %v1783_v39  ;;  %v371_v26 = vld [vmem:[%s2551_s20 + $0x1c8] sm:$0xff] }
  0xbf   : > { %506 = vmatprep.mubr.f32.mxu0 %v325_v30  ;;  %1786 = vmatprep.subr.bf16.mxu1 %v1785_v10  ;;  %v375_v30 = vld [vmem:[%s2551_s20 + $0x1e8] sm:$0xff]  ;;  %s2213_s20 = scalar_lea.vmem %s2783_s13, 4096 }
  0xc0   : > { %p2214_p11 = scmp.ne.s32.totalorder %s2783_s13, %s2213_s20  ;;  %p2221_p9 = scmp.lt.s32.totalorder %s2219_s17, %s2213_s20 }
  0xc2   : > { %507 = vmatmul.mubr.f32.gmra.mrb[10].mxu0 %v324_v34  ;;  %1788 = vmatpush1.bf16.msra.mxu1 %v1787_v13  ;;  %v2645_v34 = vld [vmem:[%s2970_s2] ss:$0 sm:$0xff]  ;;  %p2215_p1 = pnand %p2214_p11, %p2988_p0  ;;  %p2222_p12 = por %p2221_p9, %p2220_p5 }
  0xc3   : > { %511 = vmatprep.mubr.f32.mxu0 %v327_v38 }
  0xc4   : > { %p2216_p3 = pneg %p2215_p1 }
  0xc6   : > { %512 = vmatmul.mubr.f32.gmra.mrb[12].mxu0 %v326_v40  ;;  %p2223_p2 = pnand %p2222_p12, %p2216_p3 }
  0xc7   : > { %516 = vmatprep.mubr.f32.mxu0 %v329_v41 }
  0xca   : > { %517 = vmatmul.mubr.f32.gmra.mrb[14].mxu0 %v328_v42 }
  0xcb   : > { %521 = vmatprep.mubr.f32.mxu0 %v331_v43 }
  0xce   : > { %522 = vmatmul.mubr.f32.gmra.mrb[16].mxu0 %v330_v44 }
  0xcf   : > { %526 = vmatprep.mubr.f32.mxu0 %v333_v45 }
  0xd2   : > { %527 = vmatmul.mubr.f32.gmra.mrb[18].mxu0 %v332_v46 }
  0xd3   : > { %531 = vmatprep.mubr.f32.mxu0 %v335_v47 }
  0xd6   : > { %532 = vmatmul.mubr.f32.gmra.mrb[20].mxu0 %v334_v48 }
  0xd7   : > { %536 = vmatprep.mubr.f32.mxu0 %v337_v49 }
  0xda   : > { %537 = vmatmul.mubr.f32.gmra.mrb[22].mxu0 %v336_v50 }
  0xdb   : > { %541 = vmatprep.mubr.f32.mxu0 %v339_v51 }
  0xde   : > { %542 = vmatmul.mubr.f32.gmra.mrb[24].mxu0 %v338_v52 }
  0xdf   : > { %546 = vmatprep.mubr.f32.mxu0 %v341_v53 }
  0xe2   : > { %547 = vmatmul.mubr.f32.gmra.mrb[26].mxu0 %v340_v54 }
  0xe3   : > { %551 = vmatprep.mubr.f32.mxu0 %v343_v55 }
  0xe6   : > { %552 = vmatmul.mubr.f32.gmra.mrb[28].mxu0 %v342_v56 }
  0xe7   : > { %556 = vmatprep.mubr.f32.mxu0 %v345_v57 }
  0xea   : > { %557 = vmatmul.mubr.f32.gmra.mrb[30].mxu0 %v344_v58 }
  0xeb   : > { %561 = vmatprep.mubr.f32.mxu0 %v347_v59 }
  0xee   : > { %562 = vmatmul.mubr.f32.gmra.mrb[32].mxu0 %v346_v60 }
  0xef   : > { %566 = vmatprep.mubr.f32.mxu0 %v349_v61 }
  0xf2   : > { %567 = vmatmul.mubr.f32.gmra.mrb[34].mxu0 %v348_v62 }
  0xf3   : > { %571 = vmatprep.mubr.f32.mxu0 %v351_v63 }
  0xf6   : > { %572 = vmatmul.mubr.f32.gmra.mrb[36].mxu0 %v350_v1 }
  0xf7   : > { %576 = vmatprep.mubr.f32.mxu0 %v353_v0 }
  0xfa   : > { %577 = vmatmul.mubr.f32.gmra.mrb[38].mxu0 %v352_v2 }
  0xfb   : > { %581 = vmatprep.mubr.f32.mxu0 %v355_v3 }
  0xfe   : > { %582 = vmatmul.mubr.f32.gmra.mrb[40].mxu0 %v354_v4 }
  0xff   : > { %586 = vmatprep.mubr.f32.mxu0 %v357_v5 }
 0x102   : > { %587 = vmatmul.mubr.f32.gmra.mrb[42].mxu0 %v356_v6 }
 0x103   : > { %591 = vmatprep.mubr.f32.mxu0 %v359_v9 }
 0x106   : > { %592 = vmatmul.mubr.f32.gmra.mrb[44].mxu0 %v358_v14 }
 0x107   : > { %596 = vmatprep.mubr.f32.mxu0 %v361_v15 }
 0x10a   : > { %597 = vmatmul.mubr.f32.gmra.mrb[46].mxu0 %v360_v17 }
 0x10b   : > { %601 = vmatprep.mubr.f32.mxu0 %v363_v18 }
 0x10e   : > { %602 = vmatmul.mubr.f32.gmra.mrb[48].mxu0 %v362_v19 }
 0x10f   : > { %606 = vmatprep.mubr.f32.mxu0 %v365_v20 }
 0x112   : > { %607 = vmatmul.mubr.f32.gmra.mrb[50].mxu0 %v364_v21 }
 0x113   : > { %611 = vmatprep.mubr.f32.mxu0 %v367_v22 }
 0x116   : > { %612 = vmatmul.mubr.f32.gmra.mrb[52].mxu0 %v366_v23 }
 0x117   : > { %616 = vmatprep.mubr.f32.mxu0 %v369_v24 }
 0x11a   : > { %617 = vmatmul.mubr.f32.gmra.mrb[54].mxu0 %v368_v25 }
 0x11b   : > { %621 = vmatprep.mubr.f32.mxu0 %v371_v26 }
 0x11e   : > { %622 = vmatmul.mubr.f32.gmra.mrb[56].mxu0 %v370_v27 }
 0x11f   : > { %626 = vmatprep.mubr.f32.mxu0 %v373_v28 }
 0x122   : > { %627 = vmatmul.mubr.f32.gmra.mrb[58].mxu0 %v372_v29 }
 0x123   : > { %631 = vmatprep.mubr.f32.mxu0 %v375_v30 }
 0x126   : > { %632 = vmatmul.mubr.f32.gmra.mrb[60].mxu0 %v374_v31 }
 0x127   : > { %636 = vmatprep.mubr.f32.mxu0 %v377_v32 }
 0x12a   : > { %637 = vmatmul.mubr.f32.gmra.mrb[62].mxu0 %v376_v33 }
 0x181   : > { %v483_v35 = vpop.f32.mrb[0].mxu0 }
 0x182   : > { %v484_v36 = vadd.f32 %v2645_v34, %v483_v35  ;;  %v485_v37 = vpop.f32.mrb[1].mxu0 }
 0x184   : > { %v642_v38 = vmax.f32 %v484_v36, 0.0 }
 0x185   : > { %v488_v39 = vpop.f32.mrb[2].mxu0 }
 0x186   : > { %674 = vst [vmem:[%s2649_s18] sm:$0xff] %v642_v38  ;;  %v489_v40 = vadd.f32 %v2645_v34, %v488_v39  ;;  %v490_v41 = vpop.f32.mrb[3].mxu0  ;;  %815 = vmatmul.mubr.f32.vlgmr.msra.gmra.mrb[0].mxu1 %v642_v38 }
 0x187   : > { %820 = vmatprep.mubr.f32.mxu1 %v2325_v16 }
 0x188   : > { %v643_v42 = vmax.f32 %v489_v40, 0.0 }
 0x189   : > { %v493_v43 = vpop.f32.mrb[4].mxu0 }
 0x18a   : > { %675 = vst [vmem:[%s2649_s18 + $0x8] sm:$0xff] %v643_v42  ;;  %v494_v44 = vadd.f32 %v2645_v34, %v493_v43  ;;  %v495_v45 = vpop.f32.mrb[5].mxu0  ;;  %821 = vmatmul.mubr.f32.gmra.mrb[2].mxu1 %v643_v42 }
 0x18b   : > { %826 = vmatprep.mubr.f32.mxu1 %v2325_v16 }
 0x18c   : > { %v644_v46 = vmax.f32 %v494_v44, 0.0 }
 0x18d   : > { %v498_v47 = vpop.f32.mrb[6].mxu0 }
 0x18e   : > { %676 = vst [vmem:[%s2649_s18 + $0x10] sm:$0xff] %v644_v46  ;;  %v499_v48 = vadd.f32 %v2645_v34, %v498_v47  ;;  %v500_v49 = vpop.f32.mrb[7].mxu0  ;;  %827 = vmatmul.mubr.f32.gmra.mrb[4].mxu1 %v644_v46 }
 0x18f   : > { %832 = vmatprep.mubr.f32.mxu1 %v2325_v16 }
 0x190   : > { %v645_v50 = vmax.f32 %v499_v48, 0.0 }
 0x191   : > { %v503_v51 = vpop.f32.mrb[8].mxu0 }
 0x192   : > { %677 = vst [vmem:[%s2649_s18 + $0x18] sm:$0xff] %v645_v50  ;;  %v504_v52 = vadd.f32 %v2645_v34, %v503_v51  ;;  %v505_v53 = vpop.f32.mrb[9].mxu0  ;;  %833 = vmatmul.mubr.f32.gmra.mrb[6].mxu1 %v645_v50 }
 0x193   : > { %838 = vmatprep.mubr.f32.mxu1 %v2325_v16 }
 0x194   : > { %v646_v54 = vmax.f32 %v504_v52, 0.0 }
 0x195   : > { %v508_v55 = vpop.f32.mrb[10].mxu0 }
 0x196   : > { %678 = vst [vmem:[%s2649_s18 + $0x20] sm:$0xff] %v646_v54  ;;  %v509_v56 = vadd.f32 %v2645_v34, %v508_v55  ;;  %v510_v57 = vpop.f32.mrb[11].mxu0  ;;  %839 = vmatmul.mubr.f32.gmra.mrb[8].mxu1 %v646_v54 }
 0x197   : > { %844 = vmatprep.mubr.f32.mxu1 %v2325_v16 }
 0x198   : > { %v647_v58 = vmax.f32 %v509_v56, 0.0 }
 0x199   : > { %v513_v59 = vpop.f32.mrb[12].mxu0 }
 0x19a   : > { %679 = vst [vmem:[%s2649_s18 + $0x28] sm:$0xff] %v647_v58  ;;  %v514_v60 = vadd.f32 %v2645_v34, %v513_v59  ;;  %v515_v61 = vpop.f32.mrb[13].mxu0  ;;  %845 = vmatmul.mubr.f32.gmra.mrb[10].mxu1 %v647_v58 }
 0x19b   : > { %850 = vmatprep.mubr.f32.mxu1 %v2325_v16 }
 0x19c   : > { %v648_v62 = vmax.f32 %v514_v60, 0.0 }
 0x19d   : > { %v518_v63 = vpop.f32.mrb[14].mxu0 }
 0x19e   : > { %680 = vst [vmem:[%s2649_s18 + $0x30] sm:$0xff] %v648_v62  ;;  %v519_v1 = vadd.f32 %v2645_v34, %v518_v63  ;;  %v520_v0 = vpop.f32.mrb[15].mxu0  ;;  %851 = vmatmul.mubr.f32.gmra.mrb[12].mxu1 %v648_v62 }
 0x19f   : > { %856 = vmatprep.mubr.f32.mxu1 %v2325_v16 }
 0x1a0   : > { %v649_v2 = vmax.f32 %v519_v1, 0.0 }
 0x1a1   : > { %v523_v3 = vpop.f32.mrb[16].mxu0 }
 0x1a2   : > { %681 = vst [vmem:[%s2649_s18 + $0x38] sm:$0xff] %v649_v2  ;;  %v524_v4 = vadd.f32 %v2645_v34, %v523_v3  ;;  %v525_v5 = vpop.f32.mrb[17].mxu0  ;;  %857 = vmatmul.mubr.f32.gmra.mrb[14].mxu1 %v649_v2 }
 0x1a3   : > { %862 = vmatprep.mubr.f32.mxu1 %v2325_v16 }
 0x1a4   : > { %v650_v6 = vmax.f32 %v524_v4, 0.0 }
 0x1a5   : > { %v528_v7 = vpop.f32.mrb[18].mxu0 }
 0x1a6   : > { %682 = vst [vmem:[%s2649_s18 + $0x40] sm:$0xff] %v650_v6  ;;  %v529_v8 = vadd.f32 %v2645_v34, %v528_v7  ;;  %v530_v9 = vpop.f32.mrb[19].mxu0  ;;  %863 = vmatmul.mubr.f32.gmra.mrb[16].mxu1 %v650_v6 }
 0x1a7   : > { %868 = vmatprep.mubr.f32.mxu1 %v2325_v16 }
 0x1a8   : > { %v651_v10 = vmax.f32 %v529_v8, 0.0 }
 0x1a9   : > { %v533_v11 = vpop.f32.mrb[20].mxu0 }
 0x1aa   : > { %683 = vst [vmem:[%s2649_s18 + $0x48] sm:$0xff] %v651_v10  ;;  %v534_v12 = vadd.f32 %v2645_v34, %v533_v11  ;;  %v535_v13 = vpop.f32.mrb[21].mxu0  ;;  %869 = vmatmul.mubr.f32.gmra.mrb[18].mxu1 %v651_v10 }
 0x1ab   : > { %874 = vmatprep.mubr.f32.mxu1 %v2325_v16 }
 0x1ac   : > { %v652_v14 = vmax.f32 %v534_v12, 0.0 }
 0x1ad   : > { %v538_v15 = vpop.f32.mrb[22].mxu0 }
 0x1ae   : > { %684 = vst [vmem:[%s2649_s18 + $0x50] sm:$0xff] %v652_v14  ;;  %v539_v17 = vadd.f32 %v2645_v34, %v538_v15  ;;  %v540_v18 = vpop.f32.mrb[23].mxu0  ;;  %875 = vmatmul.mubr.f32.gmra.mrb[20].mxu1 %v652_v14 }
 0x1af   : > { %880 = vmatprep.mubr.f32.mxu1 %v2325_v16 }
 0x1b0   : > { %v653_v19 = vmax.f32 %v539_v17, 0.0 }
 0x1b1   : > { %v543_v20 = vpop.f32.mrb[24].mxu0 }
 0x1b2   : > { %685 = vst [vmem:[%s2649_s18 + $0x58] sm:$0xff] %v653_v19  ;;  %v544_v21 = vadd.f32 %v2645_v34, %v543_v20  ;;  %v545_v22 = vpop.f32.mrb[25].mxu0  ;;  %881 = vmatmul.mubr.f32.gmra.mrb[22].mxu1 %v653_v19 }
 0x1b3   : > { %886 = vmatprep.mubr.f32.mxu1 %v2325_v16 }
 0x1b4   : > { %v654_v23 = vmax.f32 %v544_v21, 0.0 }
 0x1b5   : > { %v548_v24 = vpop.f32.mrb[26].mxu0 }
 0x1b6   : > { %686 = vst [vmem:[%s2649_s18 + $0x60] sm:$0xff] %v654_v23  ;;  %v549_v25 = vadd.f32 %v2645_v34, %v548_v24  ;;  %v550_v26 = vpop.f32.mrb[27].mxu0  ;;  %887 = vmatmul.mubr.f32.gmra.mrb[24].mxu1 %v654_v23 }
 0x1b7   : > { %892 = vmatprep.mubr.f32.mxu1 %v2325_v16 }
 0x1b8   : > { %v655_v27 = vmax.f32 %v549_v25, 0.0 }
 0x1b9   : > { %v553_v28 = vpop.f32.mrb[28].mxu0 }
 0x1ba   : > { %687 = vst [vmem:[%s2649_s18 + $0x68] sm:$0xff] %v655_v27  ;;  %v554_v29 = vadd.f32 %v2645_v34, %v553_v28  ;;  %v555_v30 = vpop.f32.mrb[29].mxu0  ;;  %893 = vmatmul.mubr.f32.gmra.mrb[26].mxu1 %v655_v27 }
 0x1bb   : > { %898 = vmatprep.mubr.f32.mxu1 %v2325_v16 }
 0x1bc   : > { %v656_v31 = vmax.f32 %v554_v29, 0.0 }
 0x1bd   : > { %v558_v32 = vpop.f32.mrb[30].mxu0 }
 0x1be   : > { %688 = vst [vmem:[%s2649_s18 + $0x70] sm:$0xff] %v656_v31  ;;  %v559_v33 = vadd.f32 %v2645_v34, %v558_v32  ;;  %v560_v35 = vpop.f32.mrb[31].mxu0  ;;  %899 = vmatmul.mubr.f32.gmra.mrb[28].mxu1 %v656_v31 }
 0x1bf   : > { %904 = vmatprep.mubr.f32.mxu1 %v2325_v16 }
 0x1c0   : > { %v657_v36 = vmax.f32 %v559_v33, 0.0 }
 0x1c1   : > { %v563_v37 = vpop.f32.mrb[32].mxu0 }
 0x1c2   : > { %689 = vst [vmem:[%s2649_s18 + $0x78] sm:$0xff] %v657_v36  ;;  %v564_v38 = vadd.f32 %v2645_v34, %v563_v37  ;;  %v565_v39 = vpop.f32.mrb[33].mxu0  ;;  %905 = vmatmul.mubr.f32.gmra.mrb[30].mxu1 %v657_v36 }
 0x1c3   : > { %910 = vmatprep.mubr.f32.mxu1 %v2325_v16  ;;  %v740_v39 = vlaneseq }
 0x1c4   : > { %v658_v40 = vmax.f32 %v564_v38, 0.0 }
 0x1c5   : > { %v568_v41 = vpop.f32.mrb[34].mxu0 }
 0x1c6   : > { %690 = vst [vmem:[%s2649_s18 + $0x80] sm:$0xff] %v658_v40  ;;  %v569_v42 = vadd.f32 %v2645_v34, %v568_v41  ;;  %v570_v43 = vpop.f32.mrb[35].mxu0  ;;  %911 = vmatmul.mubr.f32.gmra.mrb[32].mxu1 %v658_v40  ;;  %v741_v40 = vshrl.u32 %v740_v39, 7 }
 0x1c7   : > { %916 = vmatprep.mubr.f32.mxu1 %v2325_v16 }
 0x1c8   : > { %v659_v44 = vmax.f32 %v569_v42, 0.0  ;;  %v742_v41 = vsub.s32 0, %v741_v40  ;;  %v738_v42 = vld [vmem:[%s2972_s4] sm:$0x3]  ;;  %v746_v43 = vsub.s32 1, %v741_v40 }
 0x1c9   : > { %v573_v45 = vpop.f32.mrb[36].mxu0 }
 0x1ca   : > { %691 = vst [vmem:[%s2649_s18 + $0x88] sm:$0xff] %v659_v44  ;;  %v574_v46 = vadd.f32 %v2645_v34, %v573_v45  ;;  %v575_v47 = vpop.f32.mrb[37].mxu0  ;;  %917 = vmatmul.mubr.f32.gmra.mrb[34].mxu1 %v659_v44  ;;  %v2748_v44 = vrot.slane %v738_v42, %v742_v41  ;;  %v2750_v45 = vrot.slane %v738_v42, %v746_v43 }
 0x1cb   : > { %922 = vmatprep.mubr.f32.mxu1 %v2325_v16 }
 0x1cc   : > { %v660_v48 = vmax.f32 %v574_v46, 0.0 }
 0x1cd   : > { %v578_v49 = vpop.f32.mrb[38].mxu0 }
 0x1ce   : > { %692 = vst [vmem:[%s2649_s18 + $0x90] sm:$0xff] %v660_v48  ;;  %v579_v50 = vadd.f32 %v2645_v34, %v578_v49  ;;  %v580_v51 = vpop.f32.mrb[39].mxu0  ;;  %923 = vmatmul.mubr.f32.gmra.mrb[36].mxu1 %v660_v48 }
 0x1cf   : > { %928 = vmatprep.mubr.f32.mxu1 %v2325_v16 }
 0x1d0   : > { %v661_v52 = vmax.f32 %v579_v50, 0.0 }
 0x1d1   : > { %v583_v53 = vpop.f32.mrb[40].mxu0 }
 0x1d2   : > { %693 = vst [vmem:[%s2649_s18 + $0x98] sm:$0xff] %v661_v52  ;;  %v584_v54 = vadd.f32 %v2645_v34, %v583_v53  ;;  %v585_v55 = vpop.f32.mrb[41].mxu0  ;;  %929 = vmatmul.mubr.f32.gmra.mrb[38].mxu1 %v661_v52 }
 0x1d3   : > { %934 = vmatprep.mubr.f32.mxu1 %v2325_v16 }
 0x1d4   : > { %v662_v56 = vmax.f32 %v584_v54, 0.0 }
 0x1d5   : > { %v588_v57 = vpop.f32.mrb[42].mxu0 }
 0x1d6   : > { %694 = vst [vmem:[%s2649_s18 + $0xa0] sm:$0xff] %v662_v56  ;;  %v589_v58 = vadd.f32 %v2645_v34, %v588_v57  ;;  %v590_v59 = vpop.f32.mrb[43].mxu0  ;;  %935 = vmatmul.mubr.f32.gmra.mrb[40].mxu1 %v662_v56 }
 0x1d7   : > { %940 = vmatprep.mubr.f32.mxu1 %v2325_v16 }
 0x1d8   : > { %v663_v60 = vmax.f32 %v589_v58, 0.0 }
 0x1d9   : > { %v593_v61 = vpop.f32.mrb[44].mxu0 }
 0x1da   : > { %695 = vst [vmem:[%s2649_s18 + $0xa8] sm:$0xff] %v663_v60  ;;  %v594_v62 = vadd.f32 %v2645_v34, %v593_v61  ;;  %v595_v63 = vpop.f32.mrb[45].mxu0  ;;  %941 = vmatmul.mubr.f32.gmra.mrb[42].mxu1 %v663_v60 }
 0x1db   : > { %946 = vmatprep.mubr.f32.mxu1 %v2325_v16 }
 0x1dc   : > { %v664_v1 = vmax.f32 %v594_v62, 0.0 }
 0x1dd   : > { %v598_v0 = vpop.f32.mrb[46].mxu0 }
 0x1de   : > { %696 = vst [vmem:[%s2649_s18 + $0xb0] sm:$0xff] %v664_v1  ;;  %v599_v2 = vadd.f32 %v2645_v34, %v598_v0  ;;  %v600_v3 = vpop.f32.mrb[47].mxu0  ;;  %947 = vmatmul.mubr.f32.gmra.mrb[44].mxu1 %v664_v1 }
 0x1df   : > { %952 = vmatprep.mubr.f32.mxu1 %v2325_v16 }
 0x1e0   : > { %v665_v4 = vmax.f32 %v599_v2, 0.0 }
 0x1e1   : > { %v603_v5 = vpop.f32.mrb[48].mxu0 }
 0x1e2   : > { %697 = vst [vmem:[%s2649_s18 + $0xb8] sm:$0xff] %v665_v4  ;;  %v604_v6 = vadd.f32 %v2645_v34, %v603_v5  ;;  %v605_v7 = vpop.f32.mrb[49].mxu0  ;;  %953 = vmatmul.mubr.f32.gmra.mrb[46].mxu1 %v665_v4 }
 0x1e3   : > { %958 = vmatprep.mubr.f32.mxu1 %v2325_v16 }
 0x1e4   : > { %v666_v8 = vmax.f32 %v604_v6, 0.0 }
 0x1e5   : > { %v608_v9 = vpop.f32.mrb[50].mxu0 }
 0x1e6   : > { %698 = vst [vmem:[%s2649_s18 + $0xc0] sm:$0xff] %v666_v8  ;;  %v609_v10 = vadd.f32 %v2645_v34, %v608_v9  ;;  %v610_v11 = vpop.f32.mrb[51].mxu0  ;;  %959 = vmatmul.mubr.f32.gmra.mrb[48].mxu1 %v666_v8 }
 0x1e7   : > { %964 = vmatprep.mubr.f32.mxu1 %v2325_v16 }
 0x1e8   : > { %v667_v12 = vmax.f32 %v609_v10, 0.0 }
 0x1e9   : > { %v613_v13 = vpop.f32.mrb[52].mxu0 }
 0x1ea   : > { %699 = vst [vmem:[%s2649_s18 + $0xc8] sm:$0xff] %v667_v12  ;;  %v614_v14 = vadd.f32 %v2645_v34, %v613_v13  ;;  %v615_v15 = vpop.f32.mrb[53].mxu0  ;;  %965 = vmatmul.mubr.f32.gmra.mrb[50].mxu1 %v667_v12 }
 0x1eb   : > { %970 = vmatprep.mubr.f32.mxu1 %v2325_v16 }
 0x1ec   : > { %v668_v17 = vmax.f32 %v614_v14, 0.0 }
 0x1ed   : > { %v618_v18 = vpop.f32.mrb[54].mxu0 }
 0x1ee   : > { %700 = vst [vmem:[%s2649_s18 + $0xd0] sm:$0xff] %v668_v17  ;;  %v619_v19 = vadd.f32 %v2645_v34, %v618_v18  ;;  %v620_v20 = vpop.f32.mrb[55].mxu0  ;;  %971 = vmatmul.mubr.f32.gmra.mrb[52].mxu1 %v668_v17 }
 0x1ef   : > { %976 = vmatprep.mubr.f32.mxu1 %v2325_v16 }
 0x1f0   : > { %v669_v21 = vmax.f32 %v619_v19, 0.0 }
 0x1f1   : > { %v623_v22 = vpop.f32.mrb[56].mxu0 }
 0x1f2   : > { %701 = vst [vmem:[%s2649_s18 + $0xd8] sm:$0xff] %v669_v21  ;;  %v624_v23 = vadd.f32 %v2645_v34, %v623_v22  ;;  %v625_v24 = vpop.f32.mrb[57].mxu0  ;;  %977 = vmatmul.mubr.f32.gmra.mrb[54].mxu1 %v669_v21 }
 0x1f3   : > { %982 = vmatprep.mubr.f32.mxu1 %v2325_v16 }
 0x1f4   : > { %v670_v25 = vmax.f32 %v624_v23, 0.0 }
 0x1f5   : > { %v628_v26 = vpop.f32.mrb[58].mxu0 }
 0x1f6   : > { %702 = vst [vmem:[%s2649_s18 + $0xe0] sm:$0xff] %v670_v25  ;;  %v629_v27 = vadd.f32 %v2645_v34, %v628_v26  ;;  %v630_v28 = vpop.f32.mrb[59].mxu0  ;;  %983 = vmatmul.mubr.f32.gmra.mrb[56].mxu1 %v670_v25 }
 0x1f7   : > { %988 = vmatprep.mubr.f32.mxu1 %v2325_v16 }
 0x1f8   : > { %v671_v29 = vmax.f32 %v629_v27, 0.0 }
 0x1f9   : > { %v633_v30 = vpop.f32.mrb[60].mxu0 }
 0x1fa   : > { %703 = vst [vmem:[%s2649_s18 + $0xe8] sm:$0xff] %v671_v29  ;;  %v634_v31 = vadd.f32 %v2645_v34, %v633_v30  ;;  %v635_v32 = vpop.f32.mrb[61].mxu0  ;;  %989 = vmatmul.mubr.f32.gmra.mrb[58].mxu1 %v671_v29 }
 0x1fb   : > { %994 = vmatprep.mubr.f32.mxu1 %v2325_v16 }
 0x1fc   : > { %v672_v33 = vmax.f32 %v634_v31, 0.0 }
 0x1fd   : > { %v638_v35 = vpop.f32.mrb[62].mxu0 }
 0x1fe   : > { %704 = vst [vmem:[%s2649_s18 + $0xf0] sm:$0xff] %v672_v33  ;;  %v639_v36 = vadd.f32 %v2645_v34, %v638_v35  ;;  %v640_v37 = vpop.f32.mrb[63].mxu0  ;;  %995 = vmatmul.mubr.f32.gmra.mrb[60].mxu1 %v672_v33 }
 0x1ff   : > { %1000 = vmatprep.mubr.f32.mxu1 %v2325_v16 }
 0x200   : > { %v673_v38 = vmax.f32 %v639_v36, 0.0 }
 0x202   : > { %705 = vst [vmem:[%s2649_s18 + $0xf8] sm:$0xff] %v673_v38  ;;  %1001 = vmatmul.mubr.f32.gmra.mrb[62].mxu1 %v673_v38 }
 0x259   : > { %v816_v34 = vpop.f32.mrb[0].mxu1 }
 0x25a   : > { %v817_v46 = vadd.f32 %v816_v34, %v2748_v44  ;;  %v818_v47 = vpop.f32.mrb[1].mxu1 }
 0x25b   : > { %v819_v16 = vadd.f32 %v818_v47, %v2750_v45 }
 0x25c   : > { %v1631_v48 = vmul.f32 -1.442695, %v817_v46 }
 0x25d   : > { %v1632_v49 = vmul.f32 -1.442695, %v819_v16  ;;  %v822_v50 = vpop.f32.mrb[2].mxu1 }
 0x25e   : > { %1871 = vpow2.f32 %v1631_v48  ;;  %v823_v51 = vadd.f32 %v822_v50, %v2748_v44  ;;  %v824_v52 = vpop.f32.mrb[3].mxu1 }
 0x25f   : > { %1873 = vpow2.f32 %v1632_v49  ;;  %v825_v53 = vadd.f32 %v824_v52, %v2750_v45 }
 0x260   : > { %v1633_v54 = vmul.f32 -1.442695, %v823_v51 }
 0x261   : > { %v1634_v55 = vmul.f32 -1.442695, %v825_v53  ;;  %v828_v56 = vpop.f32.mrb[4].mxu1 }
 0x262   : > { %1875 = vpow2.f32 %v1633_v54  ;;  %v829_v57 = vadd.f32 %v828_v56, %v2748_v44  ;;  %v830_v58 = vpop.f32.mrb[5].mxu1 }
 0x263   : > { %1877 = vpow2.f32 %v1634_v55  ;;  %v831_v59 = vadd.f32 %v830_v58, %v2750_v45 }
 0x264   : > { %v1635_v60 = vmul.f32 -1.442695, %v829_v57 }
 0x265   : > { %v1636_v61 = vmul.f32 -1.442695, %v831_v59  ;;  %v834_v62 = vpop.f32.mrb[6].mxu1 }
 0x266   : > { %1879 = vpow2.f32 %v1635_v60  ;;  %v835_v63 = vadd.f32 %v834_v62, %v2748_v44  ;;  %v836_v1 = vpop.f32.mrb[7].mxu1 }
 0x267   : > { %1881 = vpow2.f32 %v1636_v61  ;;  %v837_v0 = vadd.f32 %v836_v1, %v2750_v45 }
 0x268   : > { %v1872_v2 = vpop.eup %1871  ;;  %v1637_v3 = vmul.f32 -1.442695, %v835_v63 }
 0x269   : > { %v1874_v4 = vpop.eup %1873  ;;  %v1199_v5 = vadd.f32 1.0, %v1872_v2  ;;  %v1638_v6 = vmul.f32 -1.442695, %v837_v0  ;;  %v840_v7 = vpop.f32.mrb[8].mxu1 }
 0x26a   : > { %v1200_v8 = vadd.f32 1.0, %v1874_v4  ;;  %1883 = vpow2.f32 %v1637_v3  ;;  %v841_v9 = vadd.f32 %v840_v7, %v2748_v44  ;;  %v842_v10 = vpop.f32.mrb[9].mxu1 }
 0x26b   : > { %1885 = vrcp.f32 %v1199_v5  ;;  %v843_v11 = vadd.f32 %v842_v10, %v2750_v45 }
 0x26c   : > { %v1876_v12 = vpop.eup %1875  ;;  %1887 = vrcp.f32 %v1200_v8  ;;  %v1639_v13 = vmul.f32 -1.442695, %v841_v9 }
 0x26d   : > { %v1878_v14 = vpop.eup %1877  ;;  %v1201_v15 = vadd.f32 1.0, %v1876_v12  ;;  %1889 = vpow2.f32 %v1638_v6  ;;  %v1640_v17 = vmul.f32 -1.442695, %v843_v11  ;;  %v846_v18 = vpop.f32.mrb[10].mxu1 }
 0x26e   : > { %v1202_v19 = vadd.f32 1.0, %v1878_v14  ;;  %1891 = vpow2.f32 %v1639_v13  ;;  %v847_v20 = vadd.f32 %v846_v18, %v2748_v44  ;;  %v848_v21 = vpop.f32.mrb[11].mxu1 }
 0x26f   : > { %1893 = vrcp.f32 %v1201_v15  ;;  %v849_v22 = vadd.f32 %v848_v21, %v2750_v45 }
 0x270   : > { %v1880_v23 = vpop.eup %1879  ;;  %1895 = vrcp.f32 %v1202_v19  ;;  %v1641_v24 = vmul.f32 -1.442695, %v847_v20 }
 0x271   : > { %v1882_v25 = vpop.eup %1881  ;;  %v1203_v26 = vadd.f32 1.0, %v1880_v23  ;;  %1897 = vpow2.f32 %v1640_v17  ;;  %v1642_v27 = vmul.f32 -1.442695, %v849_v22  ;;  %v852_v28 = vpop.f32.mrb[12].mxu1 }
 0x272   : > { %v1204_v29 = vadd.f32 1.0, %v1882_v25  ;;  %1899 = vpow2.f32 %v1641_v24  ;;  %v853_v30 = vadd.f32 %v852_v28, %v2748_v44  ;;  %v854_v31 = vpop.f32.mrb[13].mxu1 }
 0x273   : > { %1901 = vrcp.f32 %v1203_v26  ;;  %v855_v32 = vadd.f32 %v854_v31, %v2750_v45 }
 0x274   : > { %v1884_v33 = vpop.eup %1883  ;;  %1903 = vrcp.f32 %v1204_v29  ;;  %v1643_v35 = vmul.f32 -1.442695, %v853_v30 }
 0x275   : > { %v1886_v36 = vpop.eup %1885  ;;  %v1205_v37 = vadd.f32 1.0, %v1884_v33  ;;  %1905 = vpow2.f32 %v1642_v27  ;;  %v1644_v38 = vmul.f32 -1.442695, %v855_v32  ;;  %v858_v39 = vpop.f32.mrb[14].mxu1 }
 0x276   : > { %v1888_v40 = vpop.eup %1887  ;;  %1391 = vst [vmem:[%s2768_s30] sm:$0xff] %v1886_v36  ;;  %1907 = vpow2.f32 %v1643_v35  ;;  %v859_v41 = vadd.f32 %v858_v39, %v2748_v44  ;;  %v860_v42 = vpop.f32.mrb[15].mxu1 }
 0x277   : > { %v1890_v43 = vpop.eup %1889  ;;  %1392 = vst [vmem:[%s2768_s30 + $0x8] sm:$0xff] %v1888_v40  ;;  %1909 = vrcp.f32 %v1205_v37  ;;  %v861_v34 = vadd.f32 %v860_v42, %v2750_v45 }
 0x278   : > { %v1892_v46 = vpop.eup %1891  ;;  %v1206_v47 = vadd.f32 1.0, %v1890_v43  ;;  %1911 = vpow2.f32 %v1644_v38  ;;  %v1645_v16 = vmul.f32 -1.442695, %v859_v41 }
 0x279   : > { %v1894_v48 = vpop.eup %1893  ;;  %v1207_v49 = vadd.f32 1.0, %v1892_v46  ;;  %v1646_v50 = vmul.f32 -1.442695, %v861_v34  ;;  %v864_v51 = vpop.f32.mrb[16].mxu1 }
 0x27a   : > { %v1896_v52 = vpop.eup %1895  ;;  %1393 = vst [vmem:[%s2768_s30 + $0x10] sm:$0xff] %v1894_v48  ;;  %1913 = vrcp.f32 %v1206_v47  ;;  %v865_v53 = vadd.f32 %v864_v51, %v2748_v44  ;;  %v866_v54 = vpop.f32.mrb[17].mxu1 }
 0x27b   : > { %v1898_v55 = vpop.eup %1897  ;;  %1394 = vst [vmem:[%s2768_s30 + $0x18] sm:$0xff] %v1896_v52  ;;  %1915 = vrcp.f32 %v1207_v49  ;;  %v867_v56 = vadd.f32 %v866_v54, %v2750_v45 }
 0x27c   : > { %v1900_v57 = vpop.eup %1899  ;;  %v1208_v58 = vadd.f32 1.0, %v1898_v55  ;;  %1917 = vpow2.f32 %v1645_v16  ;;  %v1647_v59 = vmul.f32 -1.442695, %v865_v53 }
 0x27d   : > { %2226 = shalt.err (!%p2223_p2)
}
 0x27e   : > { %s2227_s18 = scalar_lea.hbm %s2781_s14, 4096  ;;  %s2231_s12 = scalar_lea.hbm %s2974_s6, 8192 }
 0x27f   : > { %p2228_p13 = scmp.ne.s32.totalorder %s2781_s14, %s2227_s18  ;;  %p2232_p4 = scmp.lt.u32.totalorder %s2781_s14, %s2974_s6 }
 0x280   : > { %p2233_p7 = scmp.lt.u32.totalorder %s2231_s12, %s2227_s18  ;;  %p2235_p11 = scmp.lt.u32.totalorder %s2227_s18, %s2781_s14 }
 0x281   : > { %p2229_p6 = pnand %p2228_p13, %p2988_p0 }
 0x282   : > { %p2234_p8 = por %p2233_p7, %p2232_p4 }
 0x283   : > { %p2230_p10 = pneg %p2229_p6 }
 0x284   : > { %p2236_p1 = por %p2235_p11, %p2234_p8 }
 0x286   : > { %p2237_p3 = pnand %p2236_p1, %p2230_p10 }
 0x288   : > { %2240 = shalt.err (!%p2237_p3)
}
 0x289   : > { %s2327_s20 = smov 128   ;;  %s2328_s27 = smov 8   ;;  %v1902_v60 = vpop.eup %1901  ;;  %v1209_v61 = vadd.f32 1.0, %v1900_v57  ;;  %1919 = vpow2.f32 %v1646_v50  ;;  %v1648_v62 = vmul.f32 -1.442695, %v867_v56  ;;  %v870_v63 = vpop.f32.mrb[18].mxu1 }
 0x28a   : > { %1800 = dma.vmem_to_hbm [thread:$0]  (%p2988_p0), %s2783_s13, 4096, %s2781_s14, %s1461_s7, %s2327_s20, %s2327_s20, %s2328_s27   ;;  %v1904_v1 = vpop.eup %1903  ;;  %1921 = vrcp.f32 %v1208_v58  ;;  %v871_v0 = vadd.f32 %v870_v63, %v2748_v44  ;;  %v872_v2 = vpop.f32.mrb[19].mxu1 }
 0x28b   : > { %1395 = vst [vmem:[%s2768_s30 + $0x20] sm:$0xff] %v1902_v60  ;;  %v1906_v3 = vpop.eup %1905  ;;  %1396 = vst [vmem:[%s2768_s30 + $0x28] sm:$0xff] %v1904_v1  ;;  %1923 = vrcp.f32 %v1209_v61  ;;  %v873_v4 = vadd.f32 %v872_v2, %v2750_v45  ;;  %v876_v10 = vpop.f32.mrb[20].mxu1  ;;  %s1707_s13 = sshll.u32 %s2388_s25, 13  ;;  %s1475_s14 = sshll.u32 %s2768_s30, 4  ;;  %s2923_s14 = int_to_ptr.vmem [resolvable:$true] %s1475_s14 }
 0x28c   : > { %v1908_v5 = vpop.eup %1907  ;;  %v1210_v6 = vadd.f32 1.0, %v1906_v3  ;;  %1925 = vpow2.f32 %v1647_v59  ;;  %v1649_v7 = vmul.f32 -1.442695, %v871_v0  ;;  %v877_v13 = vadd.f32 %v876_v10, %v2748_v44  ;;  %v878_v14 = vpop.f32.mrb[21].mxu1  ;;  %s2921_s17 = scalar_lea.hbm %s2973_s5, %s1707_s13  ;;  %s1456_s18 = scalar_lea.sflag [#allocation4], %s2545_s9 }
 0x28d   : > { %v1910_v8 = vpop.eup %1909  ;;  %v1211_v9 = vadd.f32 1.0, %v1908_v5  ;;  %1927 = vpow2.f32 %v1648_v62  ;;  %v1650_v12 = vmul.f32 -1.442695, %v873_v4  ;;  %v879_v17 = vadd.f32 %v878_v14, %v2750_v45  ;;  %v882_v22 = vpop.f32.mrb[22].mxu1  ;;  %s2241_s16 = scalar_lea.vmem %s2923_s14, 8192  ;;  %s2329_s25 = smov [#allocation8]  }
 0x28e   : > { %v1912_v11 = vpop.eup %1911  ;;  %1397 = vst [vmem:[%s2768_s30 + $0x30] sm:$0xff] %v1910_v8  ;;  %1929 = vrcp.f32 %v1210_v6  ;;  %v1651_v19 = vmul.f32 -1.442695, %v877_v13  ;;  %v883_v24 = vadd.f32 %v882_v22, %v2748_v44  ;;  %v884_v25 = vpop.f32.mrb[23].mxu1  ;;  %p2242_p5 = scmp.ne.s32.totalorder %s2923_s14, %s2241_s16  ;;  %s2245_s19 = sshll.u32 %s2329_s25, 4  ;;  %s2246_s19 = int_to_ptr.vmem [resolvable:$false] %s2245_s19 }
 0x28f   : > { %1931 = vrcp.f32 %v1211_v9  ;;  %v1212_v15 = vadd.f32 1.0, %v1912_v11  ;;  %v1914_v18 = vpop.eup %1913  ;;  %v1652_v21 = vmul.f32 -1.442695, %v879_v17  ;;  %v885_v28 = vadd.f32 %v884_v25, %v2750_v45  ;;  %v888_v35 = vpop.f32.mrb[24].mxu1  ;;  %s2247_s12 = scalar_lea.vmem %s2246_s19, 16384  ;;  %p2248_p2 = scmp.lt.s32.totalorder %s2923_s14, %s2246_s19 }
 0x290   : > { %1933 = vpow2.f32 %v1649_v7  ;;  %v1916_v20 = vpop.eup %1915  ;;  %1398 = vst [vmem:[%s2768_s30 + $0x38] sm:$0xff] %v1914_v18  ;;  %v1653_v31 = vmul.f32 -1.442695, %v883_v24  ;;  %v889_v37 = vadd.f32 %v888_v35, %v2748_v44  ;;  %v890_v38 = vpop.f32.mrb[25].mxu1  ;;  %p2243_p9 = pnand %p2242_p5, %p2988_p0  ;;  %p2249_p13 = scmp.lt.s32.totalorder %s2247_s12, %s2241_s16 }
 0x291   : > { %1935 = vrcp.f32 %v1212_v15  ;;  %v1918_v23 = vpop.eup %1917  ;;  %1399 = vst [vmem:[%s2768_s30 + $0x40] sm:$0xff] %v1916_v20  ;;  %v1654_v33 = vmul.f32 -1.442695, %v885_v28  ;;  %v891_v41 = vadd.f32 %v890_v38, %v2750_v45  ;;  %v894_v16 = vpop.f32.mrb[26].mxu1 }
 0x292   : > { %1937 = vpow2.f32 %v1650_v12  ;;  %v1213_v27 = vadd.f32 1.0, %v1918_v23  ;;  %v1655_v34 = vmul.f32 -1.442695, %v889_v37  ;;  %v895_v49 = vadd.f32 %v894_v16, %v2748_v44  ;;  %v896_v50 = vpop.f32.mrb[27].mxu1  ;;  %p2244_p12 = pneg %p2243_p9  ;;  %p2250_p6 = por %p2249_p13, %p2248_p2 }
 0x293   : > { %v1920_v26 = vpop.eup %1919  ;;  %1939 = vpow2.f32 %v1651_v19  ;;  %v1656_v47 = vmul.f32 -1.442695, %v891_v41  ;;  %v897_v53 = vadd.f32 %v896_v50, %v2750_v45  ;;  %v900_v58 = vpop.f32.mrb[28].mxu1 }
 0x294   : > { %v1922_v29 = vpop.eup %1921  ;;  %v1214_v30 = vadd.f32 1.0, %v1920_v26  ;;  %1941 = vpow2.f32 %v1652_v21  ;;  %v1657_v55 = vmul.f32 -1.442695, %v895_v49  ;;  %v901_v62 = vadd.f32 %v900_v58, %v2748_v44  ;;  %v902_v63 = vpop.f32.mrb[29].mxu1  ;;  %p2251_p10 = pnand %p2250_p6, %p2244_p12 }
 0x295   : > { %v1924_v32 = vpop.eup %1923  ;;  %1400 = vst [vmem:[%s2768_s30 + $0x48] sm:$0xff] %v1922_v29  ;;  %1943 = vrcp.f32 %v1213_v27  ;;  %v1658_v61 = vmul.f32 -1.442695, %v897_v53  ;;  %v903_v2 = vadd.f32 %v902_v63, %v2750_v45  ;;  %v906_v6 = vpop.f32.mrb[30].mxu1 }
 0x296   : > { %v1926_v36 = vpop.eup %1925  ;;  %1401 = vst [vmem:[%s2768_s30 + $0x50] sm:$0xff] %v1924_v32  ;;  %1945 = vrcp.f32 %v1214_v30  ;;  %v1659_v4 = vmul.f32 -1.442695, %v901_v62  ;;  %v907_v10 = vadd.f32 %v906_v6, %v2748_v44  ;;  %v908_v11 = vpop.f32.mrb[31].mxu1 }
 0x297   : > { %v1928_v39 = vpop.eup %1927  ;;  %v1215_v40 = vadd.f32 1.0, %v1926_v36  ;;  %1947 = vpow2.f32 %v1653_v31  ;;  %v1660_v9 = vmul.f32 -1.442695, %v903_v2  ;;  %v909_v14 = vadd.f32 %v908_v11, %v2750_v45 }
 0x298   : > { %v1930_v42 = vpop.eup %1929  ;;  %v1216_v43 = vadd.f32 1.0, %v1928_v39  ;;  %1949 = vpow2.f32 %v1654_v33  ;;  %v1661_v17 = vmul.f32 -1.442695, %v907_v10 }
 0x299   : > { %v1932_v46 = vpop.eup %1931  ;;  %1402 = vst [vmem:[%s2768_s30 + $0x58] sm:$0xff] %v1930_v42  ;;  %1951 = vrcp.f32 %v1215_v40  ;;  %v912_v19 = vpop.f32.mrb[32].mxu1  ;;  %v1662_v22 = vmul.f32 -1.442695, %v909_v14 }
 0x29a   : > { %v1934_v48 = vpop.eup %1933  ;;  %1403 = vst [vmem:[%s2768_s30 + $0x60] sm:$0xff] %v1932_v46  ;;  %1953 = vrcp.f32 %v1216_v43  ;;  %v913_v23 = vadd.f32 %v912_v19, %v2748_v44  ;;  %v914_v24 = vpop.f32.mrb[33].mxu1 }
 0x29b   : > { %v1936_v51 = vpop.eup %1935  ;;  %v1217_v52 = vadd.f32 1.0, %v1934_v48  ;;  %1955 = vpow2.f32 %v1655_v34  ;;  %v915_v27 = vadd.f32 %v914_v24, %v2750_v45 }
 0x29c   : > { %v1938_v54 = vpop.eup %1937  ;;  %1404 = vst [vmem:[%s2768_s30 + $0x68] sm:$0xff] %v1936_v51  ;;  %1957 = vpow2.f32 %v1656_v47  ;;  %v1663_v29 = vmul.f32 -1.442695, %v913_v23 }
 0x29d   : > { %v1940_v56 = vpop.eup %1939  ;;  %1959 = vrcp.f32 %v1217_v52  ;;  %v1218_v57 = vadd.f32 1.0, %v1938_v54  ;;  %v1664_v32 = vmul.f32 -1.442695, %v915_v27  ;;  %v918_v33 = vpop.f32.mrb[34].mxu1 }
 0x29e   : > { %v1942_v59 = vpop.eup %1941  ;;  %v1219_v60 = vadd.f32 1.0, %v1940_v56  ;;  %1961 = vpow2.f32 %v1657_v55  ;;  %v919_v36 = vadd.f32 %v918_v33, %v2748_v44  ;;  %v920_v37 = vpop.f32.mrb[35].mxu1 }
 0x29f   : > { %v1944_v1 = vpop.eup %1943  ;;  %1963 = vrcp.f32 %v1218_v57  ;;  %v1220_v0 = vadd.f32 1.0, %v1942_v59  ;;  %v921_v39 = vadd.f32 %v920_v37, %v2750_v45 }
 0x2a0   : > { %v1946_v3 = vpop.eup %1945  ;;  %1405 = vst [vmem:[%s2768_s30 + $0x70] sm:$0xff] %v1944_v1  ;;  %1965 = vrcp.f32 %v1219_v60  ;;  %v1665_v41 = vmul.f32 -1.442695, %v919_v36 }
 0x2a1   : > { %v1948_v5 = vpop.eup %1947  ;;  %1406 = vst [vmem:[%s2768_s30 + $0x78] sm:$0xff] %v1946_v3  ;;  %1967 = vrcp.f32 %v1220_v0  ;;  %v1666_v34 = vmul.f32 -1.442695, %v921_v39  ;;  %v924_v46 = vpop.f32.mrb[36].mxu1 }
 0x2a2   : > { %v1950_v7 = vpop.eup %1949  ;;  %v1221_v8 = vadd.f32 1.0, %v1948_v5  ;;  %1969 = vpow2.f32 %v1658_v61  ;;  %v925_v48 = vadd.f32 %v924_v46, %v2748_v44  ;;  %v926_v49 = vpop.f32.mrb[37].mxu1 }
 0x2a3   : > { %v1952_v12 = vpop.eup %1951  ;;  %v1222_v13 = vadd.f32 1.0, %v1950_v7  ;;  %1971 = vpow2.f32 %v1659_v4  ;;  %v927_v51 = vadd.f32 %v926_v49, %v2750_v45 }
 0x2a4   : > { %v1954_v15 = vpop.eup %1953  ;;  %1407 = vst [vmem:[%s2768_s30 + $0x80] sm:$0xff] %v1952_v12  ;;  %1973 = vrcp.f32 %v1221_v8  ;;  %v1667_v53 = vmul.f32 -1.442695, %v925_v48 }
 0x2a5   : > { %v1956_v18 = vpop.eup %1955  ;;  %1408 = vst [vmem:[%s2768_s30 + $0x88] sm:$0xff] %v1954_v15  ;;  %1975 = vrcp.f32 %v1222_v13  ;;  %v1668_v56 = vmul.f32 -1.442695, %v927_v51  ;;  %v930_v57 = vpop.f32.mrb[38].mxu1 }
 0x2a6   : > { %v1958_v20 = vpop.eup %1957  ;;  %v1223_v21 = vadd.f32 1.0, %v1956_v18  ;;  %1977 = vpow2.f32 %v1660_v9  ;;  %v931_v60 = vadd.f32 %v930_v57, %v2748_v44  ;;  %v932_v61 = vpop.f32.mrb[39].mxu1 }
 0x2a7   : > { %v1960_v25 = vpop.eup %1959  ;;  %v1224_v26 = vadd.f32 1.0, %v1958_v20  ;;  %1979 = vpow2.f32 %v1661_v17  ;;  %v933_v63 = vadd.f32 %v932_v61, %v2750_v45 }
 0x2a8   : > { %v1962_v28 = vpop.eup %1961  ;;  %1409 = vst [vmem:[%s2768_s30 + $0x90] sm:$0xff] %v1960_v25  ;;  %1981 = vrcp.f32 %v1223_v21  ;;  %v1669_v0 = vmul.f32 -1.442695, %v931_v60 }
 0x2a9   : > { %v1964_v30 = vpop.eup %1963  ;;  %1983 = vrcp.f32 %v1224_v26  ;;  %v1225_v31 = vadd.f32 1.0, %v1962_v28  ;;  %v1670_v4 = vmul.f32 -1.442695, %v933_v63  ;;  %v936_v5 = vpop.f32.mrb[40].mxu1 }
 0x2aa   : > { %v1966_v35 = vpop.eup %1965  ;;  %1410 = vst [vmem:[%s2768_s30 + $0x98] sm:$0xff] %v1964_v30  ;;  %1985 = vpow2.f32 %v1662_v22  ;;  %v937_v7 = vadd.f32 %v936_v5, %v2748_v44  ;;  %v938_v8 = vpop.f32.mrb[41].mxu1 }
 0x2ab   : > { %v1968_v38 = vpop.eup %1967  ;;  %1411 = vst [vmem:[%s2768_s30 + $0xa0] sm:$0xff] %v1966_v35  ;;  %1987 = vrcp.f32 %v1225_v31  ;;  %v939_v11 = vadd.f32 %v938_v8, %v2750_v45 }
 0x2ac   : > { %v1970_v40 = vpop.eup %1969  ;;  %1412 = vst [vmem:[%s2768_s30 + $0xa8] sm:$0xff] %v1968_v38  ;;  %1989 = vpow2.f32 %v1663_v29  ;;  %v1671_v14 = vmul.f32 -1.442695, %v937_v7 }
 0x2ad   : > { %v1972_v42 = vpop.eup %1971  ;;  %v1226_v43 = vadd.f32 1.0, %v1970_v40  ;;  %1991 = vpow2.f32 %v1664_v32  ;;  %v1672_v18 = vmul.f32 -1.442695, %v939_v11  ;;  %v942_v19 = vpop.f32.mrb[42].mxu1 }
 0x2ae   : > { %v1974_v47 = vpop.eup %1973  ;;  %v1227_v16 = vadd.f32 1.0, %v1972_v42  ;;  %1993 = vpow2.f32 %v1665_v41  ;;  %v943_v21 = vadd.f32 %v942_v19, %v2748_v44  ;;  %v944_v22 = vpop.f32.mrb[43].mxu1 }
 0x2af   : > { %v1976_v50 = vpop.eup %1975  ;;  %1413 = vst [vmem:[%s2768_s30 + $0xb0] sm:$0xff] %v1974_v47  ;;  %1995 = vrcp.f32 %v1226_v43  ;;  %v945_v24 = vadd.f32 %v944_v22, %v2750_v45 }
 0x2b0   : > { %v1978_v52 = vpop.eup %1977  ;;  %1414 = vst [vmem:[%s2768_s30 + $0xb8] sm:$0xff] %v1976_v50  ;;  %1997 = vrcp.f32 %v1227_v16  ;;  %v1673_v27 = vmul.f32 -1.442695, %v943_v21 }
 0x2b1   : > { %v1980_v54 = vpop.eup %1979  ;;  %v1228_v55 = vadd.f32 1.0, %v1978_v52  ;;  %1999 = vpow2.f32 %v1666_v34  ;;  %v1674_v30 = vmul.f32 -1.442695, %v945_v24  ;;  %v948_v31 = vpop.f32.mrb[44].mxu1 }
 0x2b2   : > { %v1982_v58 = vpop.eup %1981  ;;  %v1229_v59 = vadd.f32 1.0, %v1980_v54  ;;  %2001 = vpow2.f32 %v1667_v53  ;;  %v949_v33 = vadd.f32 %v948_v31, %v2748_v44  ;;  %v950_v35 = vpop.f32.mrb[45].mxu1 }
 0x2b3   : > { %v1984_v62 = vpop.eup %1983  ;;  %1415 = vst [vmem:[%s2768_s30 + $0xc0] sm:$0xff] %v1982_v58  ;;  %2003 = vrcp.f32 %v1228_v55  ;;  %v951_v37 = vadd.f32 %v950_v35, %v2750_v45 }
 0x2b4   : > { %v1986_v1 = vpop.eup %1985  ;;  %1416 = vst [vmem:[%s2768_s30 + $0xc8] sm:$0xff] %v1984_v62  ;;  %2005 = vrcp.f32 %v1229_v59  ;;  %v1675_v40 = vmul.f32 -1.442695, %v949_v33 }
 0x2b5   : > { %v1988_v2 = vpop.eup %1987  ;;  %v1230_v3 = vadd.f32 1.0, %v1986_v1  ;;  %2007 = vpow2.f32 %v1668_v56  ;;  %v954_v43 = vpop.f32.mrb[46].mxu1  ;;  %v1676_v46 = vmul.f32 -1.442695, %v951_v37 }
 0x2b6   : > { %v1990_v6 = vpop.eup %1989  ;;  %1417 = vst [vmem:[%s2768_s30 + $0xd0] sm:$0xff] %v1988_v2  ;;  %2009 = vpow2.f32 %v1669_v0  ;;  %v955_v47 = vadd.f32 %v954_v43, %v2748_v44  ;;  %v956_v16 = vpop.f32.mrb[47].mxu1 }
 0x2b7   : > { %v1992_v9 = vpop.eup %1991  ;;  %2011 = vrcp.f32 %v1230_v3  ;;  %v1231_v10 = vadd.f32 1.0, %v1990_v6  ;;  %v957_v50 = vadd.f32 %v956_v16, %v2750_v45 }
 0x2b8   : > { %v1994_v12 = vpop.eup %1993  ;;  %v1232_v13 = vadd.f32 1.0, %v1992_v9  ;;  %2013 = vpow2.f32 %v1670_v4  ;;  %v1677_v52 = vmul.f32 -1.442695, %v955_v47 }
 0x2b9   : > { %v1996_v15 = vpop.eup %1995  ;;  %2015 = vrcp.f32 %v1231_v10  ;;  %v1233_v17 = vadd.f32 1.0, %v1994_v12  ;;  %v1678_v54 = vmul.f32 -1.442695, %v957_v50  ;;  %v960_v55 = vpop.f32.mrb[48].mxu1 }
 0x2ba   : > { %v1998_v20 = vpop.eup %1997  ;;  %1418 = vst [vmem:[%s2768_s30 + $0xd8] sm:$0xff] %v1996_v15  ;;  %2017 = vrcp.f32 %v1232_v13  ;;  %v961_v57 = vadd.f32 %v960_v55, %v2748_v44  ;;  %v962_v58 = vpop.f32.mrb[49].mxu1 }
 0x2bb   : > { %v2000_v23 = vpop.eup %1999  ;;  %1419 = vst [vmem:[%s2768_s30 + $0xe0] sm:$0xff] %v1998_v20  ;;  %2019 = vrcp.f32 %v1233_v17  ;;  %v963_v61 = vadd.f32 %v962_v58, %v2750_v45 }
 0x2bc   : > { %v2002_v25 = vpop.eup %2001  ;;  %v1234_v26 = vadd.f32 1.0, %v2000_v23  ;;  %2021 = vpow2.f32 %v1671_v14  ;;  %v1679_v1 = vmul.f32 -1.442695, %v961_v57 }
 0x2bd   : > { %v2004_v28 = vpop.eup %2003  ;;  %v1235_v29 = vadd.f32 1.0, %v2002_v25  ;;  %2023 = vpow2.f32 %v1672_v18  ;;  %v1680_v2 = vmul.f32 -1.442695, %v963_v61  ;;  %v966_v3 = vpop.f32.mrb[50].mxu1 }
 0x2be   : > { %v2006_v32 = vpop.eup %2005  ;;  %1420 = vst [vmem:[%s2768_s30 + $0xe8] sm:$0xff] %v2004_v28  ;;  %2025 = vrcp.f32 %v1234_v26  ;;  %v967_v5 = vadd.f32 %v966_v3, %v2748_v44  ;;  %v968_v6 = vpop.f32.mrb[51].mxu1 }
 0x2bf   : > { %v2008_v36 = vpop.eup %2007  ;;  %1421 = vst [vmem:[%s2768_s30 + $0xf0] sm:$0xff] %v2006_v32  ;;  %2027 = vrcp.f32 %v1235_v29  ;;  %v969_v9 = vadd.f32 %v968_v6, %v2750_v45 }
 0x2c0   : > { %v2010_v38 = vpop.eup %2009  ;;  %v1236_v39 = vadd.f32 1.0, %v2008_v36  ;;  %2029 = vpow2.f32 %v1673_v27  ;;  %v1681_v12 = vmul.f32 -1.442695, %v967_v5 }
 0x2c1   : > { %v2012_v41 = vpop.eup %2011  ;;  %v1237_v42 = vadd.f32 1.0, %v2010_v38  ;;  %2031 = vpow2.f32 %v1674_v30  ;;  %v1682_v14 = vmul.f32 -1.442695, %v969_v9  ;;  %v972_v15 = vpop.f32.mrb[52].mxu1 }
 0x2c2   : > { %v2014_v34 = vpop.eup %2013  ;;  %1422 = vst [vmem:[%s2768_s30 + $0xf8] sm:$0xff] %v2012_v41  ;;  %2033 = vrcp.f32 %v1236_v39  ;;  %v973_v18 = vadd.f32 %v972_v15, %v2748_v44  ;;  %v974_v19 = vpop.f32.mrb[53].mxu1 }
 0x2c3   : > { %v2016_v48 = vpop.eup %2015  ;;  %2035 = vrcp.f32 %v1237_v42  ;;  %v1238_v49 = vadd.f32 1.0, %v2014_v34  ;;  %v975_v22 = vadd.f32 %v974_v19, %v2750_v45 }
 0x2c4   : > { %v2018_v51 = vpop.eup %2017  ;;  %1423 = vst [vmem:[%s2768_s30 + $0x100] sm:$0xff] %v2016_v48  ;;  %2037 = vpow2.f32 %v1675_v40  ;;  %v1683_v24 = vmul.f32 -1.442695, %v973_v18 }
 0x2c5   : > { %v2020_v53 = vpop.eup %2019  ;;  %1424 = vst [vmem:[%s2768_s30 + $0x108] sm:$0xff] %v2018_v51  ;;  %2039 = vrcp.f32 %v1238_v49  ;;  %v978_v27 = vpop.f32.mrb[54].mxu1  ;;  %v1684_v30 = vmul.f32 -1.442695, %v975_v22 }
 0x2c6   : > { %v2022_v56 = vpop.eup %2021  ;;  %1425 = vst [vmem:[%s2768_s30 + $0x110] sm:$0xff] %v2020_v53  ;;  %2041 = vpow2.f32 %v1676_v46  ;;  %v979_v31 = vadd.f32 %v978_v27, %v2748_v44  ;;  %v980_v32 = vpop.f32.mrb[55].mxu1 }
 0x2c7   : > { %v2024_v59 = vpop.eup %2023  ;;  %v1239_v60 = vadd.f32 1.0, %v2022_v56  ;;  %2043 = vpow2.f32 %v1677_v52  ;;  %v981_v36 = vadd.f32 %v980_v32, %v2750_v45 }
 0x2c8   : > { %v2026_v62 = vpop.eup %2025  ;;  %v1240_v63 = vadd.f32 1.0, %v2024_v59  ;;  %2045 = vpow2.f32 %v1678_v54  ;;  %v1685_v38 = vmul.f32 -1.442695, %v979_v31 }
 0x2c9   : > { %v2028_v0 = vpop.eup %2027  ;;  %1426 = vst [vmem:[%s2768_s30 + $0x118] sm:$0xff] %v2026_v62  ;;  %2047 = vrcp.f32 %v1239_v60  ;;  %v984_v40 = vpop.f32.mrb[56].mxu1  ;;  %v1686_v43 = vmul.f32 -1.442695, %v981_v36 }
 0x2ca   : > { %v2030_v4 = vpop.eup %2029  ;;  %1427 = vst [vmem:[%s2768_s30 + $0x120] sm:$0xff] %v2028_v0  ;;  %2049 = vrcp.f32 %v1240_v63  ;;  %v985_v34 = vadd.f32 %v984_v40, %v2748_v44  ;;  %v986_v46 = vpop.f32.mrb[57].mxu1 }
 0x2cb   : > { %v2032_v7 = vpop.eup %2031  ;;  %v1241_v8 = vadd.f32 1.0, %v2030_v4  ;;  %2051 = vpow2.f32 %v1679_v1  ;;  %v987_v48 = vadd.f32 %v986_v46, %v2750_v45 }
 0x2cc   : > { %v2034_v10 = vpop.eup %2033  ;;  %v1242_v11 = vadd.f32 1.0, %v2032_v7  ;;  %2053 = vpow2.f32 %v1680_v2  ;;  %v1687_v50 = vmul.f32 -1.442695, %v985_v34 }
 0x2cd   : > { %v2036_v13 = vpop.eup %2035  ;;  %1428 = vst [vmem:[%s2768_s30 + $0x128] sm:$0xff] %v2034_v10  ;;  %2055 = vrcp.f32 %v1241_v8  ;;  %v990_v52 = vpop.f32.mrb[58].mxu1  ;;  %v1688_v55 = vmul.f32 -1.442695, %v987_v48 }
 0x2ce   : > { %v2038_v17 = vpop.eup %2037  ;;  %1429 = vst [vmem:[%s2768_s30 + $0x130] sm:$0xff] %v2036_v13  ;;  %2057 = vrcp.f32 %v1242_v11  ;;  %v991_v56 = vadd.f32 %v990_v52, %v2748_v44  ;;  %v992_v57 = vpop.f32.mrb[59].mxu1 }
 0x2cf   : > { %v2040_v20 = vpop.eup %2039  ;;  %v1243_v21 = vadd.f32 1.0, %v2038_v17  ;;  %2059 = vpow2.f32 %v1681_v12  ;;  %v993_v60 = vadd.f32 %v992_v57, %v2750_v45 }
 0x2d0   : > { %v2042_v23 = vpop.eup %2041  ;;  %1430 = vst [vmem:[%s2768_s30 + $0x138] sm:$0xff] %v2040_v20  ;;  %2061 = vpow2.f32 %v1682_v14  ;;  %v1689_v62 = vmul.f32 -1.442695, %v991_v56 }
 0x2d1   : > { %v2044_v25 = vpop.eup %2043  ;;  %2063 = vrcp.f32 %v1243_v21  ;;  %v1244_v26 = vadd.f32 1.0, %v2042_v23  ;;  %v1690_v0 = vmul.f32 -1.442695, %v993_v60  ;;  %v996_v2 = vpop.f32.mrb[60].mxu1 }
 0x2d2   : > { %v2046_v28 = vpop.eup %2045  ;;  %v1245_v29 = vadd.f32 1.0, %v2044_v25  ;;  %2065 = vpow2.f32 %v1683_v24  ;;  %v997_v4 = vadd.f32 %v996_v2, %v2748_v44  ;;  %v998_v5 = vpop.f32.mrb[61].mxu1 }
 0x2d3   : > { %v2048_v33 = vpop.eup %2047  ;;  %2067 = vrcp.f32 %v1244_v26  ;;  %v1246_v35 = vadd.f32 1.0, %v2046_v28  ;;  %v999_v7 = vadd.f32 %v998_v5, %v2750_v45 }
 0x2d4   : > { %v2050_v37 = vpop.eup %2049  ;;  %1431 = vst [vmem:[%s2768_s30 + $0x140] sm:$0xff] %v2048_v33  ;;  %2069 = vrcp.f32 %v1245_v29  ;;  %v1691_v9 = vmul.f32 -1.442695, %v997_v4 }
 0x2d5   : > { %v2052_v39 = vpop.eup %2051  ;;  %1432 = vst [vmem:[%s2768_s30 + $0x148] sm:$0xff] %v2050_v37  ;;  %2071 = vrcp.f32 %v1246_v35  ;;  %v1692_v12 = vmul.f32 -1.442695, %v999_v7  ;;  %v1002_v13 = vpop.f32.mrb[62].mxu1 }
 0x2d6   : > { %v2054_v41 = vpop.eup %2053  ;;  %v1247_v42 = vadd.f32 1.0, %v2052_v39  ;;  %2073 = vpow2.f32 %v1684_v30  ;;  %v1003_v17 = vadd.f32 %v1002_v13, %v2748_v44  ;;  %v1004_v18 = vpop.f32.mrb[63].mxu1 }
 0x2d7   : > { %v2056_v47 = vpop.eup %2055  ;;  %v1248_v16 = vadd.f32 1.0, %v2054_v41  ;;  %2075 = vpow2.f32 %v1685_v38  ;;  %v1005_v20 = vadd.f32 %v1004_v18, %v2750_v45 }
 0x2d8   : > { %v2058_v49 = vpop.eup %2057  ;;  %1433 = vst [vmem:[%s2768_s30 + $0x150] sm:$0xff] %v2056_v47  ;;  %2077 = vrcp.f32 %v1247_v42  ;;  %v1693_v22 = vmul.f32 -1.442695, %v1003_v17 }
 0x2d9   : > { %v2060_v51 = vpop.eup %2059  ;;  %1434 = vst [vmem:[%s2768_s30 + $0x158] sm:$0xff] %v2058_v49  ;;  %2079 = vrcp.f32 %v1248_v16  ;;  %v1694_v25 = vmul.f32 -1.442695, %v1005_v20 }
 0x2da   : > { %v2062_v53 = vpop.eup %2061  ;;  %v1249_v54 = vadd.f32 1.0, %v2060_v51  ;;  %2081 = vpow2.f32 %v1686_v43 }
 0x2db   : > { %v2064_v58 = vpop.eup %2063  ;;  %v1250_v59 = vadd.f32 1.0, %v2062_v53  ;;  %2083 = vpow2.f32 %v1687_v50 }
 0x2dc   : > { %v2066_v61 = vpop.eup %2065  ;;  %1435 = vst [vmem:[%s2768_s30 + $0x160] sm:$0xff] %v2064_v58  ;;  %2085 = vrcp.f32 %v1249_v54 }
 0x2dd   : > { %v2068_v63 = vpop.eup %2067  ;;  %2087 = vrcp.f32 %v1250_v59  ;;  %v1251_v1 = vadd.f32 1.0, %v2066_v61 }
 0x2de   : > { %v2070_v3 = vpop.eup %2069  ;;  %1436 = vst [vmem:[%s2768_s30 + $0x168] sm:$0xff] %v2068_v63  ;;  %2089 = vpow2.f32 %v1688_v55 }
 0x2df   : > { %v2072_v6 = vpop.eup %2071  ;;  %1437 = vst [vmem:[%s2768_s30 + $0x170] sm:$0xff] %v2070_v3  ;;  %2091 = vrcp.f32 %v1251_v1 }
 0x2e0   : > { %v2074_v8 = vpop.eup %2073  ;;  %1438 = vst [vmem:[%s2768_s30 + $0x178] sm:$0xff] %v2072_v6  ;;  %2093 = vpow2.f32 %v1689_v62 }
 0x2e1   : > { %v2076_v10 = vpop.eup %2075  ;;  %v1252_v11 = vadd.f32 1.0, %v2074_v8  ;;  %2095 = vpow2.f32 %v1690_v0 }
 0x2e2   : > { %v2078_v14 = vpop.eup %2077  ;;  %v1253_v15 = vadd.f32 1.0, %v2076_v10  ;;  %2097 = vpow2.f32 %v1691_v9 }
 0x2e3   : > { %v2080_v19 = vpop.eup %2079  ;;  %1439 = vst [vmem:[%s2768_s30 + $0x180] sm:$0xff] %v2078_v14  ;;  %2099 = vrcp.f32 %v1252_v11 }
 0x2e4   : > { %v2082_v21 = vpop.eup %2081  ;;  %1440 = vst [vmem:[%s2768_s30 + $0x188] sm:$0xff] %v2080_v19  ;;  %2101 = vrcp.f32 %v1253_v15 }
 0x2e5   : > { %v2084_v23 = vpop.eup %2083  ;;  %v1254_v24 = vadd.f32 1.0, %v2082_v21  ;;  %2103 = vpow2.f32 %v1692_v12 }
 0x2e6   : > { %v2086_v26 = vpop.eup %2085  ;;  %v1255_v27 = vadd.f32 1.0, %v2084_v23  ;;  %2105 = vpow2.f32 %v1693_v22 }
 0x2e7   : > { %v2088_v44 = vpop.eup %2087  ;;  %1441 = vst [vmem:[%s2768_s30 + $0x190] sm:$0xff] %v2086_v26  ;;  %2107 = vrcp.f32 %v1254_v24 }
 0x2e8   : > { %v2090_v28 = vpop.eup %2089  ;;  %1442 = vst [vmem:[%s2768_s30 + $0x198] sm:$0xff] %v2088_v44  ;;  %2109 = vrcp.f32 %v1255_v27 }
 0x2e9   : > { %v2092_v45 = vpop.eup %2091  ;;  %v1256_v29 = vadd.f32 1.0, %v2090_v28  ;;  %2111 = vpow2.f32 %v1694_v25 }
 0x2ea   : > { %v2094_v30 = vpop.eup %2093  ;;  %1443 = vst [vmem:[%s2768_s30 + $0x1a0] sm:$0xff] %v2092_v45 }
 0x2eb   : > { %v2096_v31 = vpop.eup %2095  ;;  %2113 = vrcp.f32 %v1256_v29  ;;  %v1257_v32 = vadd.f32 1.0, %v2094_v30 }
 0x2ec   : > { %v2098_v33 = vpop.eup %2097  ;;  %v1258_v35 = vadd.f32 1.0, %v2096_v31 }
 0x2ed   : > { %v2100_v36 = vpop.eup %2099  ;;  %2115 = vrcp.f32 %v1257_v32  ;;  %v1259_v37 = vadd.f32 1.0, %v2098_v33 }
 0x2ee   : > { %v2102_v38 = vpop.eup %2101  ;;  %1444 = vst [vmem:[%s2768_s30 + $0x1a8] sm:$0xff] %v2100_v36  ;;  %2117 = vrcp.f32 %v1258_v35 }
 0x2ef   : > { %v2104_v39 = vpop.eup %2103  ;;  %1445 = vst [vmem:[%s2768_s30 + $0x1b0] sm:$0xff] %v2102_v38  ;;  %2119 = vrcp.f32 %v1259_v37 }
 0x2f0   : > { %v2106_v40 = vpop.eup %2105  ;;  %v1260_v41 = vadd.f32 1.0, %v2104_v39 }
 0x2f1   : > { %v2108_v42 = vpop.eup %2107  ;;  %v1261_v43 = vadd.f32 1.0, %v2106_v40 }
 0x2f2   : > { %v2110_v34 = vpop.eup %2109  ;;  %1446 = vst [vmem:[%s2768_s30 + $0x1b8] sm:$0xff] %v2108_v42  ;;  %2121 = vrcp.f32 %v1260_v41 }
 0x2f3   : > { %v2112_v46 = vpop.eup %2111  ;;  %1447 = vst [vmem:[%s2768_s30 + $0x1c0] sm:$0xff] %v2110_v34  ;;  %2123 = vrcp.f32 %v1261_v43 }
 0x2f4   : > { %v1262_v47 = vadd.f32 1.0, %v2112_v46 }
 0x2f5   : > { %v2114_v16 = vpop.eup %2113 }
 0x2f6   : > { %1448 = vst [vmem:[%s2768_s30 + $0x1c8] sm:$0xff] %v2114_v16  ;;  %2125 = vrcp.f32 %v1262_v47 }
 0x2f7   : > { %v2116_v48 = vpop.eup %2115 }
 0x2f8   : > { %v2118_v49 = vpop.eup %2117  ;;  %1449 = vst [vmem:[%s2768_s30 + $0x1d0] sm:$0xff] %v2116_v48 }
 0x2f9   : > { %v2120_v50 = vpop.eup %2119  ;;  %1450 = vst [vmem:[%s2768_s30 + $0x1d8] sm:$0xff] %v2118_v49 }
 0x2fa   : > { %1451 = vst [vmem:[%s2768_s30 + $0x1e0] sm:$0xff] %v2120_v50 }
 0x2fc   : > { %v2122_v51 = vpop.eup %2121 }
 0x2fd   : > { %v2124_v52 = vpop.eup %2123  ;;  %1452 = vst [vmem:[%s2768_s30 + $0x1e8] sm:$0xff] %v2122_v51 }
 0x2fe   : > { %1453 = vst [vmem:[%s2768_s30 + $0x1f0] sm:$0xff] %v2124_v52 }
 0x300   : > { %v2126_v53 = vpop.eup %2125 }
 0x301   : > { %1454 = vst [vmem:[%s2768_s30 + $0x1f8] sm:$0xff] %v2126_v53 }
 0x302   : > { %2254 = shalt.err (!%p2251_p10)
}
 0x303   : > { %s2255_s30 = scalar_lea.hbm %s2921_s17, 8192  ;;  %s2259_s20 = scalar_lea.hbm %s2973_s5, 16384 }
 0x304   : > { %p2256_p4 = scmp.ne.s32.totalorder %s2921_s17, %s2255_s30  ;;  %p2260_p11 = scmp.lt.u32.totalorder %s2921_s17, %s2973_s5 }
 0x305   : > { %p2261_p1 = scmp.lt.u32.totalorder %s2259_s20, %s2255_s30  ;;  %p2263_p5 = scmp.lt.u32.totalorder %s2255_s30, %s2921_s17 }
 0x306   : > { %p2257_p7 = pnand %p2256_p4, %p2988_p0 }
 0x307   : > { %p2262_p3 = por %p2261_p1, %p2260_p11 }
 0x308   : > { %p2258_p8 = pneg %p2257_p7 }
 0x309   : > { %p2264_p9 = por %p2263_p5, %p2262_p3 }
 0x30b   : > { %p2265_p12 = pnand %p2264_p9, %p2258_p8 }
 0x30d   : > { %2268 = shalt.err (!%p2265_p12)
}
 0x30e   : > { %s2330_s7 = smov 256   ;;  %s2331_s29 = smov 16  }
 0x30f   : > { %1799 = dma.vmem_to_hbm [thread:$0]  (%p2988_p0), %s2923_s14, 8192, %s2921_s17, %s1456_s18, %s2330_s7, %s2330_s7, %s2331_s29  }
 0x310 PF: > { %s1506_s16 = sand.u32 1, %s2303_s21   ;;  %p2989_p2 = scmp.ne.s32.totalorder %s2979_s28, 0 }
 0x311   : > { %p2990_p13 = scmp.ge.s32.totalorder %s2315_s24, 2  ;;  %s1507_s25 = scalar_lea.sflag [#allocation4], %s1506_s16 }
 0x313   : > { %p1815_p6 = pnand %p2990_p13, %p2989_p2 }
 0x315   : > { %2294 = dma.done.wait (!%p1815_p6), %s1507_s25, 8192  }
 0x316   : > { %2296 = vsyncadd (!%p1815_p6), %s1507_s25, 4294959104  ;;  %s1516_s19 = scalar_lea.sflag [#allocation10], %s1506_s16 }
 0x317   : > { %2298 = dma.done.wait (!%p1815_p6), %s1516_s19, 4096  }
 0x318   : > { %2300 = vsyncadd (!%p1815_p6), %s1516_s19, 4294963200  ;;  %p24_p0 = scmp.ge.s32.totalorder %s2480_s26, 4   ;;  %s2991_s21 = smov %s2307_s22 }
 0x319   : > { %s2992_s22 = smov %s2311_s23  ;;  %s2993_s23 = smov %s2489_s11 }
 0x31a   : > { %s2994_s24 = smov %s2480_s26  ;;  %26 = sbr.rel (!%p24_p0) target bundleno = 8 (0x8), region = 110 }
 0x321   :  { %1521 = vsyncpa [#allocation3], 1 }
 0x322   :  { %1523 = vsyncpa [#allocation3 + $0x1], 1 }
 0x323   :  { %1524 = vsyncpa [#allocation6], 1 }
 0x324   :  { %1525 = vsyncpa [#allocation4], 1 }
 0x325   :  { %1527 = vsyncpa [#allocation4 + $0x1], 1 }
 0x326   :  { %1528 = vsyncpa [#allocation10], 1 }
 0x327   :  { %1530 = vsyncpa [#allocation10 + $0x1], 1 }

</bundles_post_ra>
